<compile_context>
chip_gen: v7x
topology: tpu7x:2x2x1
jax: 0.10.0
libtpu: 0.0.40
codegen_flags: <defaults>
</compile_context>

<pallas_src>
import functools

import jax
import jax.numpy as jnp
from jax.experimental import pallas as pl
from jax.experimental.pallas import tpu as pltpu


def _round_up(n, m):
    return ((n + m - 1) // m) * m


def _fused_forward_kernel(x_ref, p_ref, *rest):
    """Fused all-layer forward.  rest = (W_0, ..., W_{L-1}, o_ref).

    W_l layout (built once in prepare_params): (1 + E, Din_l, Dout_l_pad)
      slab 0     = root_l               (Din_l, Dout_l), zero-padded in N
      slab 1 + e = delta_l[:, :, e].T   (Din_l, Dout_l), zero-padded in N
    Per layer:  x <- relu( x @ W[0] + sum_e (x * p_e) @ W[1+e] )   (f32 acc)
    K (Din) is dense; only N (Dout) is padded to 128 lanes.
    """
    w_refs, o_ref = rest[:-1], rest[-1]
    x = x_ref[...].astype(jnp.float32)            # (bb, width) activations, f32
    p = p_ref[...].astype(jnp.float32)            # (bb, E)
    num_edges = p.shape[1]
    rows = x.shape[0]

    # Hoisted per-edge path selectors: the cross-lane broadcast of p[:, e] is
    # emitted once per distinct activation width and reused across layers.
    p_cols = [p[:, e:e + 1] for e in range(num_edges)]
    p_bcast = {}                                  # width -> [E broadcast operands]

    for w_ref in w_refs:
        din = w_ref.shape[1]
        width = x.shape[1]
        if width not in p_bcast:
            p_bcast[width] = [jnp.broadcast_to(c, (rows, width)) for c in p_cols]

        w_root = w_ref[0]                         # (din, n_pad)
        wdt = w_root.dtype
        # Root term + (E) accumulated per-edge matmuls; no xz concat is ever
        # materialized in VMEM and each slab's K is the true Din (dense K).
        acc = jnp.dot(x[:, :din].astype(wdt), w_root,
                      preferred_element_type=jnp.float32)
        for e in range(num_edges):
            xpe = x * p_bcast[width][e]           # f32 VPU multiply
            acc = acc + jnp.dot(xpe[:, :din].astype(wdt), w_ref[1 + e],
                                preferred_element_type=jnp.float32)
        x = jnp.maximum(acc, 0.0)                 # (bb, n_pad) f32

    o_ref[...] = x.astype(o_ref.dtype)


def prepare_params(root_layers, delta_layers, *, lane=128,
                   weight_dtype=jnp.bfloat16):
    """Done ONCE at parameter-setup time (hoisted out of the forward path).

    Folds (root, delta) of each layer into a (1+E, Din, Dout_pad) slab stack:
    K (=Din) stays dense, only N (=Dout) is zero-padded to 128 lanes.  Weights
    are stored in `weight_dtype` (bf16 default: half the HBM/VMEM bytes and
    full-rate MXU on v6e/v7x); accumulation stays f32 in-kernel.
    """
    assert len(root_layers) == len(delta_layers)
    num_edges = delta_layers[0].shape[-1]
    fused = []
    for root, delta in zip(root_layers, delta_layers):
        din, dout = root.shape
        assert delta.shape == (dout, din, num_edges)
        n_pad = _round_up(dout, lane)
        slabs = jnp.zeros((1 + num_edges, din, n_pad), jnp.float32)
        slabs = slabs.at[0, :, :dout].set(root.astype(jnp.float32))
        # (Dout, Din, E) -> (E, Din, Dout): slab 1+e holds delta[:, :, e].T
        slabs = slabs.at[1:, :, :dout].set(
            jnp.transpose(delta.astype(jnp.float32), (2, 1, 0)))
        fused.append(slabs.astype(weight_dtype))
    return dict(W=tuple(fused), E=num_edges,
                in_features=root_layers[0].shape[0],
                out_features=root_layers[-1].shape[1])


@functools.partial(jax.jit, static_argnames=("num_edges", "in_features",
                                             "out_features", "block_b",
                                             "single_buffer_weights"))
def _dendro_forward(Ws, x, node_idx, path_mat, *, num_edges, in_features,
                    out_features, block_b, single_buffer_weights):
    num_e = num_edges
    batch = x.shape[0]
    assert x.shape[1] == in_features
    n_last = Ws[-1].shape[-1]
    max_n = max(w.shape[-1] for w in Ws)

    bb = block_b
    b_p = _round_up(_round_up(max(batch, 1), 8), bb)

    # Glue (single tiny gather per call): select path columns, pad batch rows.
    p_sel = jnp.transpose(path_mat[:, node_idx]).astype(jnp.float32)   # (B, E)
    p_pad = jnp.zeros((b_p, num_e), jnp.float32).at[:batch, :].set(p_sel)
    x_pad = jnp.zeros((b_p, in_features), jnp.float32).at[:batch, :].set(
        x.astype(jnp.float32))

    w_bytes = sum(w.size * w.dtype.itemsize for w in Ws)
    flops = sum(2 * b_p * w.shape[0] * w.shape[1] * w.shape[2] for w in Ws)
    bytes_accessed = int(w_bytes + 4 * (x_pad.size + p_pad.size + b_p * n_last))

    # Explicit scoped-VMEM budget: single-buffered weights + double-buffered
    # batch blocks + activation temps, headroom, capped below v7x's 64 MiB.
    io_bytes = 2 * 4 * bb * (in_features + num_e + n_last)
    act_bytes = 4 * bb * max_n * (4 + num_e)
    vmem_limit = int(min(max(1.25 * (w_bytes + io_bytes + act_bytes) + (4 << 20),
                             16 << 20), 56 << 20))

    grid = (b_p // bb,)
    in_specs = [pl.BlockSpec((bb, in_features), lambda i: (i, 0)),
                pl.BlockSpec((bb, num_e), lambda i: (i, 0))]
    # Weights: constant block across the whole grid -> single-buffer them (the
    # default second pipeline buffer would be dead VMEM).
    w_spec_kwargs = (dict(pipeline_mode=pl.Buffered(1))
                     if single_buffer_weights else {})
    in_specs += [pl.BlockSpec(w.shape, lambda i: (0, 0, 0), **w_spec_kwargs)
                 for w in Ws]
    out_specs = pl.BlockSpec((bb, n_last), lambda i: (i, 0))

    out_pad = pl.pallas_call(
        _fused_forward_kernel,
        out_shape=jax.ShapeDtypeStruct((b_p, n_last), jnp.float32),
        grid=grid,
        in_specs=in_specs,
        out_specs=out_specs,
        compiler_params=pltpu.CompilerParams(
            dimension_semantics=("parallel",),
            vmem_limit_bytes=vmem_limit),
        cost_estimate=pl.CostEstimate(flops=flops, transcendentals=0,
                                      bytes_accessed=bytes_accessed),
    )(x_pad, p_pad, *Ws)

    return jnp.squeeze(out_pad[:batch, :out_features])


def dendro_forward(Ws, x, node_idx, path_mat, *, num_edges, in_features,
                   out_features, block_b=None):
    """Matches DeepNNDendroMatrix.forward(x, node_idx).  Ws from prepare_params."""
    batch = x.shape[0]
    b_p0 = _round_up(max(batch, 1), 8)
    if block_b is None:
        kind = ""
        try:
            kind = jax.devices()[0].device_kind.lower()
        except Exception:
            pass
        # v5e: M=128 saturates its 4x128^2 MXU and scoped VMEM is tight.
        # v6e/v7x: 256 (sweep 256-512 on v6e once VMEM allows).
        block_b = 128 if "v5" in kind else 256
        if b_p0 >= 512:
            # >= 2 grid steps so "parallel" can shard across v7x's two TCs.
            block_b = min(block_b, b_p0 // 2)
    # Enforce the f32 sublane multiple on (user-supplied) block sizes.
    bb = min(_round_up(max(int(block_b), 8), 8), b_p0)
    kwargs = dict(num_edges=num_edges, in_features=in_features,
                  out_features=out_features, block_b=bb)
    try:
        return _dendro_forward(Ws, x, node_idx, path_mat,
                               single_buffer_weights=True, **kwargs)
    except Exception:
        # Fallback if this runtime rejects pipeline_mode=pl.Buffered(1).
        return _dendro_forward(Ws, x, node_idx, path_mat,
                               single_buffer_weights=False, **kwargs)


def reference_forward(x, node_idx, root_layers, delta_layers, path_mat):
    """Pure-JAX transcription of the PyTorch forward (verification only)."""
    in_out = x
    p = path_mat[:, node_idx]                              # (E, B)
    for root, delta in zip(root_layers, delta_layers):
        eff = root[None, :, :] + jnp.transpose(
            jnp.einsum('oie,eb->oib', delta, p), (2, 1, 0))
        in_out = jax.nn.relu(jnp.einsum('bi,bio->bo', in_out, eff))
    return jnp.squeeze(in_out)


if __name__ == "__main__":
    # Small, module-consistent shapes.
    num_features = 16
    hidden_sizes = [32, 8]            # layer_sizes argument of the module
    layer_sizes = [num_features] + hidden_sizes
    num_edges = 8
    num_nodes = 10
    batch = 4

    key = jax.random.PRNGKey(0)
    k_x, k_path, *k_params = jax.random.split(key, 2 + 2 * (len(layer_sizes) - 1))

    x = jax.random.normal(k_x, (batch, num_features), dtype=jnp.float32)
    path_mat = (jax.random.uniform(k_path, (num_edges, num_nodes)) > 0.5
                ).astype(jnp.float32)
    node_idx = jnp.array([0, 3, 5, 7], dtype=jnp.int32)

    root_layers, delta_layers = [], []
    for i in range(len(layer_sizes) - 1):
        kr, kd = k_params[2 * i], k_params[2 * i + 1]
        # torch.nn.init.normal_(mean=0, std=0.01) analogue (deterministic).
        root_layers.append(0.01 * jax.random.normal(
            kr, (layer_sizes[i], layer_sizes[i + 1]), dtype=jnp.float32))
        delta_layers.append(0.01 * jax.random.normal(
            kd, (layer_sizes[i + 1], layer_sizes[i], num_edges), dtype=jnp.float32))

    ref = reference_forward(x, node_idx, root_layers, delta_layers, path_mat)

    # 1) f32-weight path: quantization-free check of the kernel math (tight tol).
    p32 = prepare_params(root_layers, delta_layers, weight_dtype=jnp.float32)
    out32 = jax.block_until_ready(dendro_forward(
        p32["W"], x, node_idx, path_mat, num_edges=p32["E"],
        in_features=p32["in_features"], out_features=p32["out_features"]))
    assert out32.shape == ref.shape, (out32.shape, ref.shape)
    assert jnp.allclose(out32, ref, rtol=1e-4, atol=1e-5), \
        float(jnp.max(jnp.abs(out32 - ref)))

    # 2) bf16-weight path (default / fast MXU path): loosened tolerance vs the
    #    f32 reference (the module itself is f64; see header TODO).
    pbf = prepare_params(root_layers, delta_layers)   # bf16 weights
    out = jax.block_until_ready(dendro_forward(
        pbf["W"], x, node_idx, path_mat, num_edges=pbf["E"],
        in_features=pbf["in_features"], out_features=pbf["out_features"]))
    assert out.shape == ref.shape, (out.shape, ref.shape)
    assert jnp.allclose(out, ref, rtol=5e-2, atol=1e-3), \
        float(jnp.max(jnp.abs(out - ref)))

    print("KERNEL_OK")
</pallas_src>

<mosaic_0001>
module attributes {stable_mosaic.version = 11 : i64} {
  func.func @_fused_forward_kernel(%arg0: i32, %arg1: memref<8x16xf32, #tpu.memory_space<vmem>>, %arg2: memref<8x8xf32, #tpu.memory_space<vmem>>, %arg3: memref<9x16x128xf32, #tpu.memory_space<vmem>>, %arg4: memref<9x32x128xf32, #tpu.memory_space<vmem>>, %arg5: memref<8x128xf32, #tpu.memory_space<vmem>>) attributes {dimension_semantics = [#tpu.dimension_semantics<parallel>], iteration_bounds = array<i64: 1>, scalar_prefetch = 0 : i64, scratch_operands = 0 : i64, tpu.core_type = #tpu.core_type<tc>, window_params = [{transform_indices = @transform_0, window_bounds = array<i64: 8, 16>}, {transform_indices = @transform_1, window_bounds = array<i64: 8, 8>}, {pipeline_mode = #tpu.pipeline_mode<synchronous>, transform_indices = @transform_2, window_bounds = array<i64: 9, 16, 128>}, {pipeline_mode = #tpu.pipeline_mode<synchronous>, transform_indices = @transform_3, window_bounds = array<i64: 9, 32, 128>}, {transform_indices = @transform_4, window_bounds = array<i64: 8, 128>}]} {
    %c0 = arith.constant 0 : index
    %c0_0 = arith.constant 0 : index
    %0 = vector.load %arg1[%c0, %c0_0] : memref<8x16xf32, #tpu.memory_space<vmem>>, vector<8x16xf32>
    %c0_1 = arith.constant 0 : index
    %c0_2 = arith.constant 0 : index
    %1 = vector.load %arg2[%c0_1, %c0_2] : memref<8x8xf32, #tpu.memory_space<vmem>>, vector<8x8xf32>
    %2 = vector.extract_strided_slice %1 {offsets = [0, 0], sizes = [8, 1], strides = [1, 1]} : vector<8x8xf32> to vector<8x1xf32>
    %3 = vector.extract_strided_slice %1 {offsets = [0, 1], sizes = [8, 1], strides = [1, 1]} : vector<8x8xf32> to vector<8x1xf32>
    %4 = vector.extract_strided_slice %1 {offsets = [0, 2], sizes = [8, 1], strides = [1, 1]} : vector<8x8xf32> to vector<8x1xf32>
    %5 = vector.extract_strided_slice %1 {offsets = [0, 3], sizes = [8, 1], strides = [1, 1]} : vector<8x8xf32> to vector<8x1xf32>
    %6 = vector.extract_strided_slice %1 {offsets = [0, 4], sizes = [8, 1], strides = [1, 1]} : vector<8x8xf32> to vector<8x1xf32>
    %7 = vector.extract_strided_slice %1 {offsets = [0, 5], sizes = [8, 1], strides = [1, 1]} : vector<8x8xf32> to vector<8x1xf32>
    %8 = vector.extract_strided_slice %1 {offsets = [0, 6], sizes = [8, 1], strides = [1, 1]} : vector<8x8xf32> to vector<8x1xf32>
    %9 = vector.extract_strided_slice %1 {offsets = [0, 7], sizes = [8, 1], strides = [1, 1]} : vector<8x8xf32> to vector<8x1xf32>
    %10 = vector.shape_cast %2 : vector<8x1xf32> to vector<8x1xf32>
    %11 = vector.broadcast %10 : vector<8x1xf32> to vector<8x16xf32>
    %12 = vector.shape_cast %3 : vector<8x1xf32> to vector<8x1xf32>
    %13 = vector.broadcast %12 : vector<8x1xf32> to vector<8x16xf32>
    %14 = vector.shape_cast %4 : vector<8x1xf32> to vector<8x1xf32>
    %15 = vector.broadcast %14 : vector<8x1xf32> to vector<8x16xf32>
    %16 = vector.shape_cast %5 : vector<8x1xf32> to vector<8x1xf32>
    %17 = vector.broadcast %16 : vector<8x1xf32> to vector<8x16xf32>
    %18 = vector.shape_cast %6 : vector<8x1xf32> to vector<8x1xf32>
    %19 = vector.broadcast %18 : vector<8x1xf32> to vector<8x16xf32>
    %20 = vector.shape_cast %7 : vector<8x1xf32> to vector<8x1xf32>
    %21 = vector.broadcast %20 : vector<8x1xf32> to vector<8x16xf32>
    %22 = vector.shape_cast %8 : vector<8x1xf32> to vector<8x1xf32>
    %23 = vector.broadcast %22 : vector<8x1xf32> to vector<8x16xf32>
    %24 = vector.shape_cast %9 : vector<8x1xf32> to vector<8x1xf32>
    %25 = vector.broadcast %24 : vector<8x1xf32> to vector<8x16xf32>
    %c0_3 = arith.constant 0 : index
    %c0_4 = arith.constant 0 : index
    %c0_5 = arith.constant 0 : index
    %26 = vector.load %arg3[%c0_3, %c0_4, %c0_5] : memref<9x16x128xf32, #tpu.memory_space<vmem>>, vector<1x16x128xf32>
    %27 = vector.shape_cast %26 : vector<1x16x128xf32> to vector<16x128xf32>
    %cst = arith.constant dense<0.000000e+00> : vector<8x128xf32>
    %28 = tpu.matmul %0, %27, %cst {dimension_numbers = #tpu.dot_dimension_numbers<[1], [0], [0], [1], [0, 0, 1, 1], [], []>} : vector<8x16xf32>, vector<16x128xf32>, vector<8x128xf32> -> vector<8x128xf32>
    %29 = arith.mulf %0, %11 : vector<8x16xf32>
    %c1 = arith.constant 1 : index
    %c0_6 = arith.constant 0 : index
    %c0_7 = arith.constant 0 : index
    %30 = vector.load %arg3[%c1, %c0_6, %c0_7] : memref<9x16x128xf32, #tpu.memory_space<vmem>>, vector<1x16x128xf32>
    %31 = vector.shape_cast %30 : vector<1x16x128xf32> to vector<16x128xf32>
    %cst_8 = arith.constant dense<0.000000e+00> : vector<8x128xf32>
    %32 = tpu.matmul %29, %31, %cst_8 {dimension_numbers = #tpu.dot_dimension_numbers<[1], [0], [0], [1], [0, 0, 1, 1], [], []>} : vector<8x16xf32>, vector<16x128xf32>, vector<8x128xf32> -> vector<8x128xf32>
    %33 = arith.addf %28, %32 : vector<8x128xf32>
    %34 = arith.mulf %0, %13 : vector<8x16xf32>
    %c2 = arith.constant 2 : index
    %c0_9 = arith.constant 0 : index
    %c0_10 = arith.constant 0 : index
    %35 = vector.load %arg3[%c2, %c0_9, %c0_10] : memref<9x16x128xf32, #tpu.memory_space<vmem>>, vector<1x16x128xf32>
    %36 = vector.shape_cast %35 : vector<1x16x128xf32> to vector<16x128xf32>
    %cst_11 = arith.constant dense<0.000000e+00> : vector<8x128xf32>
    %37 = tpu.matmul %34, %36, %cst_11 {dimension_numbers = #tpu.dot_dimension_numbers<[1], [0], [0], [1], [0, 0, 1, 1], [], []>} : vector<8x16xf32>, vector<16x128xf32>, vector<8x128xf32> -> vector<8x128xf32>
    %38 = arith.addf %33, %37 : vector<8x128xf32>
    %39 = arith.mulf %0, %15 : vector<8x16xf32>
    %c3 = arith.constant 3 : index
    %c0_12 = arith.constant 0 : index
    %c0_13 = arith.constant 0 : index
    %40 = vector.load %arg3[%c3, %c0_12, %c0_13] : memref<9x16x128xf32, #tpu.memory_space<vmem>>, vector<1x16x128xf32>
    %41 = vector.shape_cast %40 : vector<1x16x128xf32> to vector<16x128xf32>
    %cst_14 = arith.constant dense<0.000000e+00> : vector<8x128xf32>
    %42 = tpu.matmul %39, %41, %cst_14 {dimension_numbers = #tpu.dot_dimension_numbers<[1], [0], [0], [1], [0, 0, 1, 1], [], []>} : vector<8x16xf32>, vector<16x128xf32>, vector<8x128xf32> -> vector<8x128xf32>
    %43 = arith.addf %38, %42 : vector<8x128xf32>
    %44 = arith.mulf %0, %17 : vector<8x16xf32>
    %c4 = arith.constant 4 : index
    %c0_15 = arith.constant 0 : index
    %c0_16 = arith.constant 0 : index
    %45 = vector.load %arg3[%c4, %c0_15, %c0_16] : memref<9x16x128xf32, #tpu.memory_space<vmem>>, vector<1x16x128xf32>
    %46 = vector.shape_cast %45 : vector<1x16x128xf32> to vector<16x128xf32>
    %cst_17 = arith.constant dense<0.000000e+00> : vector<8x128xf32>
    %47 = tpu.matmul %44, %46, %cst_17 {dimension_numbers = #tpu.dot_dimension_numbers<[1], [0], [0], [1], [0, 0, 1, 1], [], []>} : vector<8x16xf32>, vector<16x128xf32>, vector<8x128xf32> -> vector<8x128xf32>
    %48 = arith.addf %43, %47 : vector<8x128xf32>
    %49 = arith.mulf %0, %19 : vector<8x16xf32>
    %c5 = arith.constant 5 : index
    %c0_18 = arith.constant 0 : index
    %c0_19 = arith.constant 0 : index
    %50 = vector.load %arg3[%c5, %c0_18, %c0_19] : memref<9x16x128xf32, #tpu.memory_space<vmem>>, vector<1x16x128xf32>
    %51 = vector.shape_cast %50 : vector<1x16x128xf32> to vector<16x128xf32>
    %cst_20 = arith.constant dense<0.000000e+00> : vector<8x128xf32>
    %52 = tpu.matmul %49, %51, %cst_20 {dimension_numbers = #tpu.dot_dimension_numbers<[1], [0], [0], [1], [0, 0, 1, 1], [], []>} : vector<8x16xf32>, vector<16x128xf32>, vector<8x128xf32> -> vector<8x128xf32>
    %53 = arith.addf %48, %52 : vector<8x128xf32>
    %54 = arith.mulf %0, %21 : vector<8x16xf32>
    %c6 = arith.constant 6 : index
    %c0_21 = arith.constant 0 : index
    %c0_22 = arith.constant 0 : index
    %55 = vector.load %arg3[%c6, %c0_21, %c0_22] : memref<9x16x128xf32, #tpu.memory_space<vmem>>, vector<1x16x128xf32>
    %56 = vector.shape_cast %55 : vector<1x16x128xf32> to vector<16x128xf32>
    %cst_23 = arith.constant dense<0.000000e+00> : vector<8x128xf32>
    %57 = tpu.matmul %54, %56, %cst_23 {dimension_numbers = #tpu.dot_dimension_numbers<[1], [0], [0], [1], [0, 0, 1, 1], [], []>} : vector<8x16xf32>, vector<16x128xf32>, vector<8x128xf32> -> vector<8x128xf32>
    %58 = arith.addf %53, %57 : vector<8x128xf32>
    %59 = arith.mulf %0, %23 : vector<8x16xf32>
    %c7 = arith.constant 7 : index
    %c0_24 = arith.constant 0 : index
    %c0_25 = arith.constant 0 : index
    %60 = vector.load %arg3[%c7, %c0_24, %c0_25] : memref<9x16x128xf32, #tpu.memory_space<vmem>>, vector<1x16x128xf32>
    %61 = vector.shape_cast %60 : vector<1x16x128xf32> to vector<16x128xf32>
    %cst_26 = arith.constant dense<0.000000e+00> : vector<8x128xf32>
    %62 = tpu.matmul %59, %61, %cst_26 {dimension_numbers = #tpu.dot_dimension_numbers<[1], [0], [0], [1], [0, 0, 1, 1], [], []>} : vector<8x16xf32>, vector<16x128xf32>, vector<8x128xf32> -> vector<8x128xf32>
    %63 = arith.addf %58, %62 : vector<8x128xf32>
    %64 = arith.mulf %0, %25 : vector<8x16xf32>
    %c8 = arith.constant 8 : index
    %c0_27 = arith.constant 0 : index
    %c0_28 = arith.constant 0 : index
    %65 = vector.load %arg3[%c8, %c0_27, %c0_28] : memref<9x16x128xf32, #tpu.memory_space<vmem>>, vector<1x16x128xf32>
    %66 = vector.shape_cast %65 : vector<1x16x128xf32> to vector<16x128xf32>
    %cst_29 = arith.constant dense<0.000000e+00> : vector<8x128xf32>
    %67 = tpu.matmul %64, %66, %cst_29 {dimension_numbers = #tpu.dot_dimension_numbers<[1], [0], [0], [1], [0, 0, 1, 1], [], []>} : vector<8x16xf32>, vector<16x128xf32>, vector<8x128xf32> -> vector<8x128xf32>
    %68 = arith.addf %63, %67 : vector<8x128xf32>
    %cst_30 = arith.constant 0.000000e+00 : f32
    %69 = vector.broadcast %cst_30 : f32 to vector<8x128xf32>
    %70 = arith.maximumf %68, %69 : vector<8x128xf32>
    %71 = vector.shape_cast %2 : vector<8x1xf32> to vector<8x1xf32>
    %72 = vector.broadcast %71 : vector<8x1xf32> to vector<8x128xf32>
    %73 = vector.shape_cast %3 : vector<8x1xf32> to vector<8x1xf32>
    %74 = vector.broadcast %73 : vector<8x1xf32> to vector<8x128xf32>
    %75 = vector.shape_cast %4 : vector<8x1xf32> to vector<8x1xf32>
    %76 = vector.broadcast %75 : vector<8x1xf32> to vector<8x128xf32>
    %77 = vector.shape_cast %5 : vector<8x1xf32> to vector<8x1xf32>
    %78 = vector.broadcast %77 : vector<8x1xf32> to vector<8x128xf32>
    %79 = vector.shape_cast %6 : vector<8x1xf32> to vector<8x1xf32>
    %80 = vector.broadcast %79 : vector<8x1xf32> to vector<8x128xf32>
    %81 = vector.shape_cast %7 : vector<8x1xf32> to vector<8x1xf32>
    %82 = vector.broadcast %81 : vector<8x1xf32> to vector<8x128xf32>
    %83 = vector.shape_cast %8 : vector<8x1xf32> to vector<8x1xf32>
    %84 = vector.broadcast %83 : vector<8x1xf32> to vector<8x128xf32>
    %85 = vector.shape_cast %9 : vector<8x1xf32> to vector<8x1xf32>
    %86 = vector.broadcast %85 : vector<8x1xf32> to vector<8x128xf32>
    %c0_31 = arith.constant 0 : index
    %c0_32 = arith.constant 0 : index
    %c0_33 = arith.constant 0 : index
    %87 = vector.load %arg4[%c0_31, %c0_32, %c0_33] : memref<9x32x128xf32, #tpu.memory_space<vmem>>, vector<1x32x128xf32>
    %88 = vector.shape_cast %87 : vector<1x32x128xf32> to vector<32x128xf32>
    %89 = vector.extract_strided_slice %70 {offsets = [0, 0], sizes = [8, 32], strides = [1, 1]} : vector<8x128xf32> to vector<8x32xf32>
    %cst_34 = arith.constant dense<0.000000e+00> : vector<8x128xf32>
    %90 = tpu.matmul %89, %88, %cst_34 {dimension_numbers = #tpu.dot_dimension_numbers<[1], [0], [0], [1], [0, 0, 1, 1], [], []>} : vector<8x32xf32>, vector<32x128xf32>, vector<8x128xf32> -> vector<8x128xf32>
    %91 = arith.mulf %70, %72 : vector<8x128xf32>
    %92 = vector.extract_strided_slice %91 {offsets = [0, 0], sizes = [8, 32], strides = [1, 1]} : vector<8x128xf32> to vector<8x32xf32>
    %c1_35 = arith.constant 1 : index
    %c0_36 = arith.constant 0 : index
    %c0_37 = arith.constant 0 : index
    %93 = vector.load %arg4[%c1_35, %c0_36, %c0_37] : memref<9x32x128xf32, #tpu.memory_space<vmem>>, vector<1x32x128xf32>
    %94 = vector.shape_cast %93 : vector<1x32x128xf32> to vector<32x128xf32>
    %cst_38 = arith.constant dense<0.000000e+00> : vector<8x128xf32>
    %95 = tpu.matmul %92, %94, %cst_38 {dimension_numbers = #tpu.dot_dimension_numbers<[1], [0], [0], [1], [0, 0, 1, 1], [], []>} : vector<8x32xf32>, vector<32x128xf32>, vector<8x128xf32> -> vector<8x128xf32>
    %96 = arith.addf %90, %95 : vector<8x128xf32>
    %97 = arith.mulf %70, %74 : vector<8x128xf32>
    %98 = vector.extract_strided_slice %97 {offsets = [0, 0], sizes = [8, 32], strides = [1, 1]} : vector<8x128xf32> to vector<8x32xf32>
    %c2_39 = arith.constant 2 : index
    %c0_40 = arith.constant 0 : index
    %c0_41 = arith.constant 0 : index
    %99 = vector.load %arg4[%c2_39, %c0_40, %c0_41] : memref<9x32x128xf32, #tpu.memory_space<vmem>>, vector<1x32x128xf32>
    %100 = vector.shape_cast %99 : vector<1x32x128xf32> to vector<32x128xf32>
    %cst_42 = arith.constant dense<0.000000e+00> : vector<8x128xf32>
    %101 = tpu.matmul %98, %100, %cst_42 {dimension_numbers = #tpu.dot_dimension_numbers<[1], [0], [0], [1], [0, 0, 1, 1], [], []>} : vector<8x32xf32>, vector<32x128xf32>, vector<8x128xf32> -> vector<8x128xf32>
    %102 = arith.addf %96, %101 : vector<8x128xf32>
    %103 = arith.mulf %70, %76 : vector<8x128xf32>
    %104 = vector.extract_strided_slice %103 {offsets = [0, 0], sizes = [8, 32], strides = [1, 1]} : vector<8x128xf32> to vector<8x32xf32>
    %c3_43 = arith.constant 3 : index
    %c0_44 = arith.constant 0 : index
    %c0_45 = arith.constant 0 : index
    %105 = vector.load %arg4[%c3_43, %c0_44, %c0_45] : memref<9x32x128xf32, #tpu.memory_space<vmem>>, vector<1x32x128xf32>
    %106 = vector.shape_cast %105 : vector<1x32x128xf32> to vector<32x128xf32>
    %cst_46 = arith.constant dense<0.000000e+00> : vector<8x128xf32>
    %107 = tpu.matmul %104, %106, %cst_46 {dimension_numbers = #tpu.dot_dimension_numbers<[1], [0], [0], [1], [0, 0, 1, 1], [], []>} : vector<8x32xf32>, vector<32x128xf32>, vector<8x128xf32> -> vector<8x128xf32>
    %108 = arith.addf %102, %107 : vector<8x128xf32>
    %109 = arith.mulf %70, %78 : vector<8x128xf32>
    %110 = vector.extract_strided_slice %109 {offsets = [0, 0], sizes = [8, 32], strides = [1, 1]} : vector<8x128xf32> to vector<8x32xf32>
    %c4_47 = arith.constant 4 : index
    %c0_48 = arith.constant 0 : index
    %c0_49 = arith.constant 0 : index
    %111 = vector.load %arg4[%c4_47, %c0_48, %c0_49] : memref<9x32x128xf32, #tpu.memory_space<vmem>>, vector<1x32x128xf32>
    %112 = vector.shape_cast %111 : vector<1x32x128xf32> to vector<32x128xf32>
    %cst_50 = arith.constant dense<0.000000e+00> : vector<8x128xf32>
    %113 = tpu.matmul %110, %112, %cst_50 {dimension_numbers = #tpu.dot_dimension_numbers<[1], [0], [0], [1], [0, 0, 1, 1], [], []>} : vector<8x32xf32>, vector<32x128xf32>, vector<8x128xf32> -> vector<8x128xf32>
    %114 = arith.addf %108, %113 : vector<8x128xf32>
    %115 = arith.mulf %70, %80 : vector<8x128xf32>
    %116 = vector.extract_strided_slice %115 {offsets = [0, 0], sizes = [8, 32], strides = [1, 1]} : vector<8x128xf32> to vector<8x32xf32>
    %c5_51 = arith.constant 5 : index
    %c0_52 = arith.constant 0 : index
    %c0_53 = arith.constant 0 : index
    %117 = vector.load %arg4[%c5_51, %c0_52, %c0_53] : memref<9x32x128xf32, #tpu.memory_space<vmem>>, vector<1x32x128xf32>
    %118 = vector.shape_cast %117 : vector<1x32x128xf32> to vector<32x128xf32>
    %cst_54 = arith.constant dense<0.000000e+00> : vector<8x128xf32>
    %119 = tpu.matmul %116, %118, %cst_54 {dimension_numbers = #tpu.dot_dimension_numbers<[1], [0], [0], [1], [0, 0, 1, 1], [], []>} : vector<8x32xf32>, vector<32x128xf32>, vector<8x128xf32> -> vector<8x128xf32>
    %120 = arith.addf %114, %119 : vector<8x128xf32>
    %121 = arith.mulf %70, %82 : vector<8x128xf32>
    %122 = vector.extract_strided_slice %121 {offsets = [0, 0], sizes = [8, 32], strides = [1, 1]} : vector<8x128xf32> to vector<8x32xf32>
    %c6_55 = arith.constant 6 : index
    %c0_56 = arith.constant 0 : index
    %c0_57 = arith.constant 0 : index
    %123 = vector.load %arg4[%c6_55, %c0_56, %c0_57] : memref<9x32x128xf32, #tpu.memory_space<vmem>>, vector<1x32x128xf32>
    %124 = vector.shape_cast %123 : vector<1x32x128xf32> to vector<32x128xf32>
    %cst_58 = arith.constant dense<0.000000e+00> : vector<8x128xf32>
    %125 = tpu.matmul %122, %124, %cst_58 {dimension_numbers = #tpu.dot_dimension_numbers<[1], [0], [0], [1], [0, 0, 1, 1], [], []>} : vector<8x32xf32>, vector<32x128xf32>, vector<8x128xf32> -> vector<8x128xf32>
    %126 = arith.addf %120, %125 : vector<8x128xf32>
    %127 = arith.mulf %70, %84 : vector<8x128xf32>
    %128 = vector.extract_strided_slice %127 {offsets = [0, 0], sizes = [8, 32], strides = [1, 1]} : vector<8x128xf32> to vector<8x32xf32>
    %c7_59 = arith.constant 7 : index
    %c0_60 = arith.constant 0 : index
    %c0_61 = arith.constant 0 : index
    %129 = vector.load %arg4[%c7_59, %c0_60, %c0_61] : memref<9x32x128xf32, #tpu.memory_space<vmem>>, vector<1x32x128xf32>
    %130 = vector.shape_cast %129 : vector<1x32x128xf32> to vector<32x128xf32>
    %cst_62 = arith.constant dense<0.000000e+00> : vector<8x128xf32>
    %131 = tpu.matmul %128, %130, %cst_62 {dimension_numbers = #tpu.dot_dimension_numbers<[1], [0], [0], [1], [0, 0, 1, 1], [], []>} : vector<8x32xf32>, vector<32x128xf32>, vector<8x128xf32> -> vector<8x128xf32>
    %132 = arith.addf %126, %131 : vector<8x128xf32>
    %133 = arith.mulf %70, %86 : vector<8x128xf32>
    %134 = vector.extract_strided_slice %133 {offsets = [0, 0], sizes = [8, 32], strides = [1, 1]} : vector<8x128xf32> to vector<8x32xf32>
    %c8_63 = arith.constant 8 : index
    %c0_64 = arith.constant 0 : index
    %c0_65 = arith.constant 0 : index
    %135 = vector.load %arg4[%c8_63, %c0_64, %c0_65] : memref<9x32x128xf32, #tpu.memory_space<vmem>>, vector<1x32x128xf32>
    %136 = vector.shape_cast %135 : vector<1x32x128xf32> to vector<32x128xf32>
    %cst_66 = arith.constant dense<0.000000e+00> : vector<8x128xf32>
    %137 = tpu.matmul %134, %136, %cst_66 {dimension_numbers = #tpu.dot_dimension_numbers<[1], [0], [0], [1], [0, 0, 1, 1], [], []>} : vector<8x32xf32>, vector<32x128xf32>, vector<8x128xf32> -> vector<8x128xf32>
    %138 = arith.addf %132, %137 : vector<8x128xf32>
    %cst_67 = arith.constant 0.000000e+00 : f32
    %139 = vector.broadcast %cst_67 : f32 to vector<8x128xf32>
    %140 = arith.maximumf %138, %139 : vector<8x128xf32>
    %c0_68 = arith.constant 0 : index
    %c0_69 = arith.constant 0 : index
    %141 = vector.load %arg5[%c0_68, %c0_69] : memref<8x128xf32, #tpu.memory_space<vmem>>, vector<8x128xf32>
    tpu.vector_store %arg5[%c0_68, %c0_69], %140 {strides = array<i32>} : memref<8x128xf32, #tpu.memory_space<vmem>>, vector<8x128xf32>,
    return
  }
  func.func @transform_0(%arg0: i32) -> (i32, i32) {
    %c0_i32 = arith.constant 0 : i32
    %c0_i32_0 = arith.constant 0 : i32
    return %arg0, %c0_i32 : i32, i32
  }
  func.func @transform_1(%arg0: i32) -> (i32, i32) {
    %c0_i32 = arith.constant 0 : i32
    %c0_i32_0 = arith.constant 0 : i32
    return %arg0, %c0_i32 : i32, i32
  }
  func.func @transform_2(%arg0: i32) -> (i32, i32, i32) {
    %c0_i32 = arith.constant 0 : i32
    %c0_i32_0 = arith.constant 0 : i32
    %c0_i32_1 = arith.constant 0 : i32
    %c0_i32_2 = arith.constant 0 : i32
    return %c0_i32, %c0_i32_0, %c0_i32_1 : i32, i32, i32
  }
  func.func @transform_3(%arg0: i32) -> (i32, i32, i32) {
    %c0_i32 = arith.constant 0 : i32
    %c0_i32_0 = arith.constant 0 : i32
    %c0_i32_1 = arith.constant 0 : i32
    %c0_i32_2 = arith.constant 0 : i32
    return %c0_i32, %c0_i32_0, %c0_i32_1 : i32, i32, i32
  }
  func.func @transform_4(%arg0: i32) -> (i32, i32) {
    %c0_i32 = arith.constant 0 : i32
    %c0_i32_0 = arith.constant 0 : i32
    return %arg0, %c0_i32 : i32, i32
  }
}

module attributes {stable_mosaic.version = 11 : i64} {
  func.func @_fused_forward_kernel(%arg0: i32, %arg1: memref<8x16xf32, #tpu.memory_space<vmem>>, %arg2: memref<8x8xf32, #tpu.memory_space<vmem>>, %arg3: memref<9x16x128xf32, #tpu.memory_space<vmem>>, %arg4: memref<9x32x128xf32, #tpu.memory_space<vmem>>, %arg5: memref<8x128xf32, #tpu.memory_space<vmem>>) attributes {dimension_semantics = [#tpu.dimension_semantics<parallel>], iteration_bounds = array<i64: 1>, scalar_prefetch = 0 : i64, scratch_operands = 0 : i64, tpu.core_type = #tpu.core_type<tc>, window_params = [{transform_indices = @transform_0, window_bounds = array<i64: 8, 16>}, {transform_indices = @transform_1, window_bounds = array<i64: 8, 8>}, {pipeline_mode = #tpu.pipeline_mode<synchronous>, transform_indices = @transform_2, window_bounds = array<i64: 9, 16, 128>}, {pipeline_mode = #tpu.pipeline_mode<synchronous>, transform_indices = @transform_3, window_bounds = array<i64: 9, 32, 128>}, {transform_indices = @transform_4, window_bounds = array<i64: 8, 128>}]} {
    %c0 = arith.constant 0 : index
    %c0_0 = arith.constant 0 : index
    %0 = vector.load %arg1[%c0, %c0_0] : memref<8x16xf32, #tpu.memory_space<vmem>>, vector<8x16xf32>
    %c0_1 = arith.constant 0 : index
    %c0_2 = arith.constant 0 : index
    %1 = vector.load %arg2[%c0_1, %c0_2] : memref<8x8xf32, #tpu.memory_space<vmem>>, vector<8x8xf32>
    %2 = vector.extract_strided_slice %1 {offsets = [0, 0], sizes = [8, 1], strides = [1, 1]} : vector<8x8xf32> to vector<8x1xf32>
    %3 = vector.extract_strided_slice %1 {offsets = [0, 1], sizes = [8, 1], strides = [1, 1]} : vector<8x8xf32> to vector<8x1xf32>
    %4 = vector.extract_strided_slice %1 {offsets = [0, 2], sizes = [8, 1], strides = [1, 1]} : vector<8x8xf32> to vector<8x1xf32>
    %5 = vector.extract_strided_slice %1 {offsets = [0, 3], sizes = [8, 1], strides = [1, 1]} : vector<8x8xf32> to vector<8x1xf32>
    %6 = vector.extract_strided_slice %1 {offsets = [0, 4], sizes = [8, 1], strides = [1, 1]} : vector<8x8xf32> to vector<8x1xf32>
    %7 = vector.extract_strided_slice %1 {offsets = [0, 5], sizes = [8, 1], strides = [1, 1]} : vector<8x8xf32> to vector<8x1xf32>
    %8 = vector.extract_strided_slice %1 {offsets = [0, 6], sizes = [8, 1], strides = [1, 1]} : vector<8x8xf32> to vector<8x1xf32>
    %9 = vector.extract_strided_slice %1 {offsets = [0, 7], sizes = [8, 1], strides = [1, 1]} : vector<8x8xf32> to vector<8x1xf32>
    %10 = vector.shape_cast %2 : vector<8x1xf32> to vector<8x1xf32>
    %11 = vector.broadcast %10 : vector<8x1xf32> to vector<8x16xf32>
    %12 = vector.shape_cast %3 : vector<8x1xf32> to vector<8x1xf32>
    %13 = vector.broadcast %12 : vector<8x1xf32> to vector<8x16xf32>
    %14 = vector.shape_cast %4 : vector<8x1xf32> to vector<8x1xf32>
    %15 = vector.broadcast %14 : vector<8x1xf32> to vector<8x16xf32>
    %16 = vector.shape_cast %5 : vector<8x1xf32> to vector<8x1xf32>
    %17 = vector.broadcast %16 : vector<8x1xf32> to vector<8x16xf32>
    %18 = vector.shape_cast %6 : vector<8x1xf32> to vector<8x1xf32>
    %19 = vector.broadcast %18 : vector<8x1xf32> to vector<8x16xf32>
    %20 = vector.shape_cast %7 : vector<8x1xf32> to vector<8x1xf32>
    %21 = vector.broadcast %20 : vector<8x1xf32> to vector<8x16xf32>
    %22 = vector.shape_cast %8 : vector<8x1xf32> to vector<8x1xf32>
    %23 = vector.broadcast %22 : vector<8x1xf32> to vector<8x16xf32>
    %24 = vector.shape_cast %9 : vector<8x1xf32> to vector<8x1xf32>
    %25 = vector.broadcast %24 : vector<8x1xf32> to vector<8x16xf32>
    %c0_3 = arith.constant 0 : index
    %c0_4 = arith.constant 0 : index
    %c0_5 = arith.constant 0 : index
    %26 = vector.load %arg3[%c0_3, %c0_4, %c0_5] : memref<9x16x128xf32, #tpu.memory_space<vmem>>, vector<1x16x128xf32>
    %27 = vector.shape_cast %26 : vector<1x16x128xf32> to vector<16x128xf32>
    %cst = arith.constant dense<0.000000e+00> : vector<8x128xf32>
    %28 = tpu.matmul %0, %27, %cst {dimension_numbers = #tpu.dot_dimension_numbers<[1], [0], [0], [1], [0, 0, 1, 1], [], []>} : vector<8x16xf32>, vector<16x128xf32>, vector<8x128xf32> -> vector<8x128xf32>
    %29 = arith.mulf %0, %11 : vector<8x16xf32>
    %c1 = arith.constant 1 : index
    %c0_6 = arith.constant 0 : index
    %c0_7 = arith.constant 0 : index
    %30 = vector.load %arg3[%c1, %c0_6, %c0_7] : memref<9x16x128xf32, #tpu.memory_space<vmem>>, vector<1x16x128xf32>
    %31 = vector.shape_cast %30 : vector<1x16x128xf32> to vector<16x128xf32>
    %cst_8 = arith.constant dense<0.000000e+00> : vector<8x128xf32>
    %32 = tpu.matmul %29, %31, %cst_8 {dimension_numbers = #tpu.dot_dimension_numbers<[1], [0], [0], [1], [0, 0, 1, 1], [], []>} : vector<8x16xf32>, vector<16x128xf32>, vector<8x128xf32> -> vector<8x128xf32>
    %33 = arith.addf %28, %32 : vector<8x128xf32>
    %34 = arith.mulf %0, %13 : vector<8x16xf32>
    %c2 = arith.constant 2 : index
    %c0_9 = arith.constant 0 : index
    %c0_10 = arith.constant 0 : index
    %35 = vector.load %arg3[%c2, %c0_9, %c0_10] : memref<9x16x128xf32, #tpu.memory_space<vmem>>, vector<1x16x128xf32>
    %36 = vector.shape_cast %35 : vector<1x16x128xf32> to vector<16x128xf32>
    %cst_11 = arith.constant dense<0.000000e+00> : vector<8x128xf32>
    %37 = tpu.matmul %34, %36, %cst_11 {dimension_numbers = #tpu.dot_dimension_numbers<[1], [0], [0], [1], [0, 0, 1, 1], [], []>} : vector<8x16xf32>, vector<16x128xf32>, vector<8x128xf32> -> vector<8x128xf32>
    %38 = arith.addf %33, %37 : vector<8x128xf32>
    %39 = arith.mulf %0, %15 : vector<8x16xf32>
    %c3 = arith.constant 3 : index
    %c0_12 = arith.constant 0 : index
    %c0_13 = arith.constant 0 : index
    %40 = vector.load %arg3[%c3, %c0_12, %c0_13] : memref<9x16x128xf32, #tpu.memory_space<vmem>>, vector<1x16x128xf32>
    %41 = vector.shape_cast %40 : vector<1x16x128xf32> to vector<16x128xf32>
    %cst_14 = arith.constant dense<0.000000e+00> : vector<8x128xf32>
    %42 = tpu.matmul %39, %41, %cst_14 {dimension_numbers = #tpu.dot_dimension_numbers<[1], [0], [0], [1], [0, 0, 1, 1], [], []>} : vector<8x16xf32>, vector<16x128xf32>, vector<8x128xf32> -> vector<8x128xf32>
    %43 = arith.addf %38, %42 : vector<8x128xf32>
    %44 = arith.mulf %0, %17 : vector<8x16xf32>
    %c4 = arith.constant 4 : index
    %c0_15 = arith.constant 0 : index
    %c0_16 = arith.constant 0 : index
    %45 = vector.load %arg3[%c4, %c0_15, %c0_16] : memref<9x16x128xf32, #tpu.memory_space<vmem>>, vector<1x16x128xf32>
    %46 = vector.shape_cast %45 : vector<1x16x128xf32> to vector<16x128xf32>
    %cst_17 = arith.constant dense<0.000000e+00> : vector<8x128xf32>
    %47 = tpu.matmul %44, %46, %cst_17 {dimension_numbers = #tpu.dot_dimension_numbers<[1], [0], [0], [1], [0, 0, 1, 1], [], []>} : vector<8x16xf32>, vector<16x128xf32>, vector<8x128xf32> -> vector<8x128xf32>
    %48 = arith.addf %43, %47 : vector<8x128xf32>
    %49 = arith.mulf %0, %19 : vector<8x16xf32>
    %c5 = arith.constant 5 : index
    %c0_18 = arith.constant 0 : index
    %c0_19 = arith.constant 0 : index
    %50 = vector.load %arg3[%c5, %c0_18, %c0_19] : memref<9x16x128xf32, #tpu.memory_space<vmem>>, vector<1x16x128xf32>
    %51 = vector.shape_cast %50 : vector<1x16x128xf32> to vector<16x128xf32>
    %cst_20 = arith.constant dense<0.000000e+00> : vector<8x128xf32>
    %52 = tpu.matmul %49, %51, %cst_20 {dimension_numbers = #tpu.dot_dimension_numbers<[1], [0], [0], [1], [0, 0, 1, 1], [], []>} : vector<8x16xf32>, vector<16x128xf32>, vector<8x128xf32> -> vector<8x128xf32>
    %53 = arith.addf %48, %52 : vector<8x128xf32>
    %54 = arith.mulf %0, %21 : vector<8x16xf32>
    %c6 = arith.constant 6 : index
    %c0_21 = arith.constant 0 : index
    %c0_22 = arith.constant 0 : index
    %55 = vector.load %arg3[%c6, %c0_21, %c0_22] : memref<9x16x128xf32, #tpu.memory_space<vmem>>, vector<1x16x128xf32>
    %56 = vector.shape_cast %55 : vector<1x16x128xf32> to vector<16x128xf32>
    %cst_23 = arith.constant dense<0.000000e+00> : vector<8x128xf32>
    %57 = tpu.matmul %54, %56, %cst_23 {dimension_numbers = #tpu.dot_dimension_numbers<[1], [0], [0], [1], [0, 0, 1, 1], [], []>} : vector<8x16xf32>, vector<16x128xf32>, vector<8x128xf32> -> vector<8x128xf32>
    %58 = arith.addf %53, %57 : vector<8x128xf32>
    %59 = arith.mulf %0, %23 : vector<8x16xf32>
    %c7 = arith.constant 7 : index
    %c0_24 = arith.constant 0 : index
    %c0_25 = arith.constant 0 : index
    %60 = vector.load %arg3[%c7, %c0_24, %c0_25] : memref<9x16x128xf32, #tpu.memory_space<vmem>>, vector<1x16x128xf32>
    %61 = vector.shape_cast %60 : vector<1x16x128xf32> to vector<16x128xf32>
    %cst_26 = arith.constant dense<0.000000e+00> : vector<8x128xf32>
    %62 = tpu.matmul %59, %61, %cst_26 {dimension_numbers = #tpu.dot_dimension_numbers<[1], [0], [0], [1], [0, 0, 1, 1], [], []>} : vector<8x16xf32>, vector<16x128xf32>, vector<8x128xf32> -> vector<8x128xf32>
    %63 = arith.addf %58, %62 : vector<8x128xf32>
    %64 = arith.mulf %0, %25 : vector<8x16xf32>
    %c8 = arith.constant 8 : index
    %c0_27 = arith.constant 0 : index
    %c0_28 = arith.constant 0 : index
    %65 = vector.load %arg3[%c8, %c0_27, %c0_28] : memref<9x16x128xf32, #tpu.memory_space<vmem>>, vector<1x16x128xf32>
    %66 = vector.shape_cast %65 : vector<1x16x128xf32> to vector<16x128xf32>
    %cst_29 = arith.constant dense<0.000000e+00> : vector<8x128xf32>
    %67 = tpu.matmul %64, %66, %cst_29 {dimension_numbers = #tpu.dot_dimension_numbers<[1], [0], [0], [1], [0, 0, 1, 1], [], []>} : vector<8x16xf32>, vector<16x128xf32>, vector<8x128xf32> -> vector<8x128xf32>
    %68 = arith.addf %63, %67 : vector<8x128xf32>
    %cst_30 = arith.constant 0.000000e+00 : f32
    %69 = vector.broadcast %cst_30 : f32 to vector<8x128xf32>
    %70 = arith.maximumf %68, %69 : vector<8x128xf32>
    %71 = vector.shape_cast %2 : vector<8x1xf32> to vector<8x1xf32>
    %72 = vector.broadcast %71 : vector<8x1xf32> to vector<8x128xf32>
    %73 = vector.shape_cast %3 : vector<8x1xf32> to vector<8x1xf32>
    %74 = vector.broadcast %73 : vector<8x1xf32> to vector<8x128xf32>
    %75 = vector.shape_cast %4 : vector<8x1xf32> to vector<8x1xf32>
    %76 = vector.broadcast %75 : vector<8x1xf32> to vector<8x128xf32>
    %77 = vector.shape_cast %5 : vector<8x1xf32> to vector<8x1xf32>
    %78 = vector.broadcast %77 : vector<8x1xf32> to vector<8x128xf32>
    %79 = vector.shape_cast %6 : vector<8x1xf32> to vector<8x1xf32>
    %80 = vector.broadcast %79 : vector<8x1xf32> to vector<8x128xf32>
    %81 = vector.shape_cast %7 : vector<8x1xf32> to vector<8x1xf32>
    %82 = vector.broadcast %81 : vector<8x1xf32> to vector<8x128xf32>
    %83 = vector.shape_cast %8 : vector<8x1xf32> to vector<8x1xf32>
    %84 = vector.broadcast %83 : vector<8x1xf32> to vector<8x128xf32>
    %85 = vector.shape_cast %9 : vector<8x1xf32> to vector<8x1xf32>
    %86 = vector.broadcast %85 : vector<8x1xf32> to vector<8x128xf32>
    %c0_31 = arith.constant 0 : index
    %c0_32 = arith.constant 0 : index
    %c0_33 = arith.constant 0 : index
    %87 = vector.load %arg4[%c0_31, %c0_32, %c0_33] : memref<9x32x128xf32, #tpu.memory_space<vmem>>, vector<1x32x128xf32>
    %88 = vector.shape_cast %87 : vector<1x32x128xf32> to vector<32x128xf32>
    %89 = vector.extract_strided_slice %70 {offsets = [0, 0], sizes = [8, 32], strides = [1, 1]} : vector<8x128xf32> to vector<8x32xf32>
    %cst_34 = arith.constant dense<0.000000e+00> : vector<8x128xf32>
    %90 = tpu.matmul %89, %88, %cst_34 {dimension_numbers = #tpu.dot_dimension_numbers<[1], [0], [0], [1], [0, 0, 1, 1], [], []>} : vector<8x32xf32>, vector<32x128xf32>, vector<8x128xf32> -> vector<8x128xf32>
    %91 = arith.mulf %70, %72 : vector<8x128xf32>
    %92 = vector.extract_strided_slice %91 {offsets = [0, 0], sizes = [8, 32], strides = [1, 1]} : vector<8x128xf32> to vector<8x32xf32>
    %c1_35 = arith.constant 1 : index
    %c0_36 = arith.constant 0 : index
    %c0_37 = arith.constant 0 : index
    %93 = vector.load %arg4[%c1_35, %c0_36, %c0_37] : memref<9x32x128xf32, #tpu.memory_space<vmem>>, vector<1x32x128xf32>
    %94 = vector.shape_cast %93 : vector<1x32x128xf32> to vector<32x128xf32>
    %cst_38 = arith.constant dense<0.000000e+00> : vector<8x128xf32>
    %95 = tpu.matmul %92, %94, %cst_38 {dimension_numbers = #tpu.dot_dimension_numbers<[1], [0], [0], [1], [0, 0, 1, 1], [], []>} : vector<8x32xf32>, vector<32x128xf32>, vector<8x128xf32> -> vector<8x128xf32>
    %96 = arith.addf %90, %95 : vector<8x128xf32>
    %97 = arith.mulf %70, %74 : vector<8x128xf32>
    %98 = vector.extract_strided_slice %97 {offsets = [0, 0], sizes = [8, 32], strides = [1, 1]} : vector<8x128xf32> to vector<8x32xf32>
    %c2_39 = arith.constant 2 : index
    %c0_40 = arith.constant 0 : index
    %c0_41 = arith.constant 0 : index
    %99 = vector.load %arg4[%c2_39, %c0_40, %c0_41] : memref<9x32x128xf32, #tpu.memory_space<vmem>>, vector<1x32x128xf32>
    %100 = vector.shape_cast %99 : vector<1x32x128xf32> to vector<32x128xf32>
    %cst_42 = arith.constant dense<0.000000e+00> : vector<8x128xf32>
    %101 = tpu.matmul %98, %100, %cst_42 {dimension_numbers = #tpu.dot_dimension_numbers<[1], [0], [0], [1], [0, 0, 1, 1], [], []>} : vector<8x32xf32>, vector<32x128xf32>, vector<8x128xf32> -> vector<8x128xf32>
    %102 = arith.addf %96, %101 : vector<8x128xf32>
    %103 = arith.mulf %70, %76 : vector<8x128xf32>
    %104 = vector.extract_strided_slice %103 {offsets = [0, 0], sizes = [8, 32], strides = [1, 1]} : vector<8x128xf32> to vector<8x32xf32>
    %c3_43 = arith.constant 3 : index
    %c0_44 = arith.constant 0 : index
    %c0_45 = arith.constant 0 : index
    %105 = vector.load %arg4[%c3_43, %c0_44, %c0_45] : memref<9x32x128xf32, #tpu.memory_space<vmem>>, vector<1x32x128xf32>
    %106 = vector.shape_cast %105 : vector<1x32x128xf32> to vector<32x128xf32>
    %cst_46 = arith.constant dense<0.000000e+00> : vector<8x128xf32>
    %107 = tpu.matmul %104, %106, %cst_46 {dimension_numbers = #tpu.dot_dimension_numbers<[1], [0], [0], [1], [0, 0, 1, 1], [], []>} : vector<8x32xf32>, vector<32x128xf32>, vector<8x128xf32> -> vector<8x128xf32>
    %108 = arith.addf %102, %107 : vector<8x128xf32>
    %109 = arith.mulf %70, %78 : vector<8x128xf32>
    %110 = vector.extract_strided_slice %109 {offsets = [0, 0], sizes = [8, 32], strides = [1, 1]} : vector<8x128xf32> to vector<8x32xf32>
    %c4_47 = arith.constant 4 : index
    %c0_48 = arith.constant 0 : index
    %c0_49 = arith.constant 0 : index
    %111 = vector.load %arg4[%c4_47, %c0_48, %c0_49] : memref<9x32x128xf32, #tpu.memory_space<vmem>>, vector<1x32x128xf32>
    %112 = vector.shape_cast %111 : vector<1x32x128xf32> to vector<32x128xf32>
    %cst_50 = arith.constant dense<0.000000e+00> : vector<8x128xf32>
    %113 = tpu.matmul %110, %112, %cst_50 {dimension_numbers = #tpu.dot_dimension_numbers<[1], [0], [0], [1], [0, 0, 1, 1], [], []>} : vector<8x32xf32>, vector<32x128xf32>, vector<8x128xf32> -> vector<8x128xf32>
    %114 = arith.addf %108, %113 : vector<8x128xf32>
    %115 = arith.mulf %70, %80 : vector<8x128xf32>
    %116 = vector.extract_strided_slice %115 {offsets = [0, 0], sizes = [8, 32], strides = [1, 1]} : vector<8x128xf32> to vector<8x32xf32>
    %c5_51 = arith.constant 5 : index
    %c0_52 = arith.constant 0 : index
    %c0_53 = arith.constant 0 : index
    %117 = vector.load %arg4[%c5_51, %c0_52, %c0_53] : memref<9x32x128xf32, #tpu.memory_space<vmem>>, vector<1x32x128xf32>
    %118 = vector.shape_cast %117 : vector<1x32x128xf32> to vector<32x128xf32>
    %cst_54 = arith.constant dense<0.000000e+00> : vector<8x128xf32>
    %119 = tpu.matmul %116, %118, %cst_54 {dimension_numbers = #tpu.dot_dimension_numbers<[1], [0], [0], [1], [0, 0, 1, 1], [], []>} : vector<8x32xf32>, vector<32x128xf32>, vector<8x128xf32> -> vector<8x128xf32>
    %120 = arith.addf %114, %119 : vector<8x128xf32>
    %121 = arith.mulf %70, %82 : vector<8x128xf32>
    %122 = vector.extract_strided_slice %121 {offsets = [0, 0], sizes = [8, 32], strides = [1, 1]} : vector<8x128xf32> to vector<8x32xf32>
    %c6_55 = arith.constant 6 : index
    %c0_56 = arith.constant 0 : index
    %c0_57 = arith.constant 0 : index
    %123 = vector.load %arg4[%c6_55, %c0_56, %c0_57] : memref<9x32x128xf32, #tpu.memory_space<vmem>>, vector<1x32x128xf32>
    %124 = vector.shape_cast %123 : vector<1x32x128xf32> to vector<32x128xf32>
    %cst_58 = arith.constant dense<0.000000e+00> : vector<8x128xf32>
    %125 = tpu.matmul %122, %124, %cst_58 {dimension_numbers = #tpu.dot_dimension_numbers<[1], [0], [0], [1], [0, 0, 1, 1], [], []>} : vector<8x32xf32>, vector<32x128xf32>, vector<8x128xf32> -> vector<8x128xf32>
    %126 = arith.addf %120, %125 : vector<8x128xf32>
    %127 = arith.mulf %70, %84 : vector<8x128xf32>
    %128 = vector.extract_strided_slice %127 {offsets = [0, 0], sizes = [8, 32], strides = [1, 1]} : vector<8x128xf32> to vector<8x32xf32>
    %c7_59 = arith.constant 7 : index
    %c0_60 = arith.constant 0 : index
    %c0_61 = arith.constant 0 : index
    %129 = vector.load %arg4[%c7_59, %c0_60, %c0_61] : memref<9x32x128xf32, #tpu.memory_space<vmem>>, vector<1x32x128xf32>
    %130 = vector.shape_cast %129 : vector<1x32x128xf32> to vector<32x128xf32>
    %cst_62 = arith.constant dense<0.000000e+00> : vector<8x128xf32>
    %131 = tpu.matmul %128, %130, %cst_62 {dimension_numbers = #tpu.dot_dimension_numbers<[1], [0], [0], [1], [0, 0, 1, 1], [], []>} : vector<8x32xf32>, vector<32x128xf32>, vector<8x128xf32> -> vector<8x128xf32>
    %132 = arith.addf %126, %131 : vector<8x128xf32>
    %133 = arith.mulf %70, %86 : vector<8x128xf32>
    %134 = vector.extract_strided_slice %133 {offsets = [0, 0], sizes = [8, 32], strides = [1, 1]} : vector<8x128xf32> to vector<8x32xf32>
    %c8_63 = arith.constant 8 : index
    %c0_64 = arith.constant 0 : index
    %c0_65 = arith.constant 0 : index
    %135 = vector.load %arg4[%c8_63, %c0_64, %c0_65] : memref<9x32x128xf32, #tpu.memory_space<vmem>>, vector<1x32x128xf32>
    %136 = vector.shape_cast %135 : vector<1x32x128xf32> to vector<32x128xf32>
    %cst_66 = arith.constant dense<0.000000e+00> : vector<8x128xf32>
    %137 = tpu.matmul %134, %136, %cst_66 {dimension_numbers = #tpu.dot_dimension_numbers<[1], [0], [0], [1], [0, 0, 1, 1], [], []>} : vector<8x32xf32>, vector<32x128xf32>, vector<8x128xf32> -> vector<8x128xf32>
    %138 = arith.addf %132, %137 : vector<8x128xf32>
    %cst_67 = arith.constant 0.000000e+00 : f32
    %139 = vector.broadcast %cst_67 : f32 to vector<8x128xf32>
    %140 = arith.maximumf %138, %139 : vector<8x128xf32>
    %c0_68 = arith.constant 0 : index
    %c0_69 = arith.constant 0 : index
    %141 = vector.load %arg5[%c0_68, %c0_69] : memref<8x128xf32, #tpu.memory_space<vmem>>, vector<8x128xf32>
    tpu.vector_store %arg5[%c0_68, %c0_69], %140 {strides = array<i32>} : memref<8x128xf32, #tpu.memory_space<vmem>>, vector<8x128xf32>,
    return
  }
  func.func @transform_0(%arg0: i32) -> (i32, i32) {
    %c0_i32 = arith.constant 0 : i32
    %c0_i32_0 = arith.constant 0 : i32
    return %arg0, %c0_i32 : i32, i32
  }
  func.func @transform_1(%arg0: i32) -> (i32, i32) {
    %c0_i32 = arith.constant 0 : i32
    %c0_i32_0 = arith.constant 0 : i32
    return %arg0, %c0_i32 : i32, i32
  }
  func.func @transform_2(%arg0: i32) -> (i32, i32, i32) {
    %c0_i32 = arith.constant 0 : i32
    %c0_i32_0 = arith.constant 0 : i32
    %c0_i32_1 = arith.constant 0 : i32
    %c0_i32_2 = arith.constant 0 : i32
    return %c0_i32, %c0_i32_0, %c0_i32_1 : i32, i32, i32
  }
  func.func @transform_3(%arg0: i32) -> (i32, i32, i32) {
    %c0_i32 = arith.constant 0 : i32
    %c0_i32_0 = arith.constant 0 : i32
    %c0_i32_1 = arith.constant 0 : i32
    %c0_i32_2 = arith.constant 0 : i32
    return %c0_i32, %c0_i32_0, %c0_i32_1 : i32, i32, i32
  }
  func.func @transform_4(%arg0: i32) -> (i32, i32) {
    %c0_i32 = arith.constant 0 : i32
    %c0_i32_0 = arith.constant 0 : i32
    return %arg0, %c0_i32 : i32, i32
  }
}

</mosaic_0001>

<bundles_post_ra>
// kernel: _dendro_forward.1
= control target key start
LH: loop header
LB: loop body
LE: loop exit
PB: predicated region body
PF: predicated region fallthrough
CT: control target
= control target key end

     0   :  { %9 = vsyncpa [#allocation3], 0  ;;  %s2149_s0 = inlined_call_operand.vmem [shape: f32[8,16], index: 0, kind: input, shape index: {}]   ;;  %s2150_s1 = inlined_call_operand.vmem [shape: f32[8,8], index: 1, kind: input, shape index: {}]   ;;  %s2151_s2 = inlined_call_operand.hbm [shape: f32[9,16,128], index: 2, kind: input, shape index: {}]   ;;  %s2152_s3 = inlined_call_operand.hbm [shape: f32[9,32,128], index: 3, kind: input, shape index: {}]   ;;  %s2153_s4 = inlined_call_operand.vmem [shape: f32[8,128], index: 4, kind: output, shape index: {}]  }
   0x1   :  { %10 = vsyncpa [#allocation5], 0  ;;  %s1941_s15 = smov [#allocation2]   ;;  %s1893_s19 = scalar_lea.hbm %s2151_s2, 2304 }
   0x2   :  { %s20_s16 = sshll.u32 %s1941_s15, 4  ;;  %p1894_p0 = scmp.ne.s32.totalorder %s2151_s2, %s1893_s19  ;;  %s21_s16 = int_to_ptr.vmem [resolvable:$true] %s20_s16 }
   0x3   :  { %p1897_p1 = scmp.lt.u32.totalorder %s1893_s19, %s2151_s2 }
   0x5   :  { %p1899_p2 = pnand %p1897_p1, %p1894_p0 }
   0x7   :  { %1902 = shalt.err (!%p1899_p2)
}
   0x8   :  { %s1903_s24 = scalar_lea.vmem %s21_s16, 2304  ;;  %p1908_p4 = scmp.lt.s32.totalorder %s21_s16, %s21_s16 }
   0x9   :  { %p1904_p3 = scmp.ne.s32.totalorder %s21_s16, %s1903_s24  ;;  %p1909_p5 = scmp.lt.s32.totalorder %s1903_s24, %s1903_s24 }
   0xb   :  { %p1910_p6 = por %p1909_p5, %p1908_p4 }
   0xd   :  { %p1911_p7 = pnand %p1910_p6, %p1904_p3 }
   0xf   :  { %1914 = shalt.err (!%p1911_p7)
}
  0x10   :  { %s1942_s25 = smov 128   ;;  %s1943_s26 = smov 8  }
  0x11   :  { %26 = dma.hbm_to_vmem [thread:$0]  %s2151_s2, 2304, %s21_s16, [#allocation3], %s1942_s25, %s1942_s25, %s1943_s26  }
  0x12   :  { %s1944_s29 = smov [#allocation4]   ;;  %s1915_s7 = scalar_lea.hbm %s2152_s3, 4608 }
  0x13   :  { %s32_s30 = sshll.u32 %s1944_s29, 4  ;;  %p1916_p8 = scmp.ne.s32.totalorder %s2152_s3, %s1915_s7  ;;  %s33_s30 = int_to_ptr.vmem [resolvable:$true] %s32_s30 }
  0x14   :  { %p1919_p9 = scmp.lt.u32.totalorder %s1915_s7, %s2152_s3 }
  0x16   :  { %p1921_p10 = pnand %p1919_p9, %p1916_p8 }
  0x18   :  { %1924 = shalt.err (!%p1921_p10)
}
  0x19   :  { %s1925_s12 = scalar_lea.vmem %s33_s30, 4608  ;;  %p1930_p12 = scmp.lt.s32.totalorder %s33_s30, %s33_s30 }
  0x1a   :  { %p1926_p11 = scmp.ne.s32.totalorder %s33_s30, %s1925_s12  ;;  %p1931_p13 = scmp.lt.s32.totalorder %s1925_s12, %s1925_s12 }
  0x1c   :  { %p1932_p0 = por %p1931_p13, %p1930_p12 }
  0x1e   :  { %p1933_p1 = pnand %p1932_p0, %p1926_p11 }
  0x20   :  { %1936 = shalt.err (!%p1933_p1)
}
  0x21   :  { %38 = dma.hbm_to_vmem [thread:$0]  %s2152_s3, 4608, %s33_s30, [#allocation5], %s1942_s25, %s1942_s25, %s1943_s26  }
  0x22   :  { %1937 = dma.done.wait [#allocation3], 2304  }
  0x23   :  { %1938 = vsyncadd [#allocation3], 4294964992 }
  0x24   :  { %1939 = dma.done.wait [#allocation5], 4608  }
  0x25   :  { %1940 = vsyncadd [#allocation5], 4294962688  ;;  %v1945_v0 = vmov 0   ;;  %v1946_v1 = vmov 2   ;;  %v1947_v2 = vmov 0.0|0.0   ;;  %v46_v3 = vld [vmem:[%s2150_s1] sm:$0xff] }
  0x26   :  { %1884 = vset.pattern.permute.xlu0 %v1945_v0  ;;  %1886 = vset.pattern.permute.xlu1 %v1946_v1  ;;  %v84_v4 = vld [vmem:[#allocation2 + $0x10] sm:$0xff]  ;;  %v85_v5 = vld [vmem:[#allocation2 + $0x18] sm:$0xff]  ;;  %vm1948_vm0 = vmmov 0   ;;  %v1949_v7 = vmov 0.0   ;;  %v1950_v8 = vmov 1   ;;  %v1951_v9 = vmov 3  }
  0x27   :  { %1757 = vmatprep.subr.bf16.mxu0 %v1947_v2  ;;  %1796 = vmatprep.subr.bf16.mxu1 %v1947_v2  ;;  %v1758_v6 = vpack.c.bf16 %v85_v5, %v84_v4  ;;  %v1952_v10 = vmov 4   ;;  %v1953_v11 = vmov 5   ;;  %v1954_v12 = vmov 6   ;;  %v939_v14 = vld [vmem:[#allocation4 + $0x40] sm:$0xff]  ;;  %v940_v15 = vld [vmem:[#allocation4 + $0x48] sm:$0xff]  ;;  %v80_v17 = vld [vmem:[#allocation2] sm:$0xff] }
  0x28   :  { %49 = vperm.xlu0 %1884, %v46_v3   ;;  %57 = vperm.xlu1 %1886, %v46_v3   ;;  %v1955_v13 = vmov 7   ;;  %v1797_v16 = vpack.c.bf16 %v940_v15, %v939_v14  ;;  %v81_v18 = vld [vmem:[#allocation2 + $0x8] sm:$0xff]  ;;  %v2019_v19 = vld [vmem:[%s2149_s0] sm:$0xff]  ;;  %vm86_vm1 = vcmask 130048   ;;  %v313_v27 = vld [vmem:[#allocation2 + $0x30] sm:$0xff]  ;;  %vm790_vm2 = vcmask 261120  }
  0x29   :  { %1599 = vmatprep.mubr.msk.f32.mxu0 %vm1948_vm0, %v1949_v7  ;;  %1688 = vmatprep.mubr.msk.f32.mxu1 %vm1948_vm0, %v1949_v7  ;;  %v1761_v21 = vpack.c.bf16 %v81_v18, %v80_v17  ;;  %v235_v23 = vld [vmem:[#allocation2 + $0x20] sm:$0xff]  ;;  %v236_v24 = vld [vmem:[#allocation2 + $0x28] sm:$0xff]  ;;  %v314_v28 = vld [vmem:[#allocation2 + $0x38] sm:$0xff] }
  0x2a   :  { %1759 = vmatpush3.bf16.msra.mxu0 %v1758_v6  ;;  %1798 = vmatpush3.bf16.msra.mxu1 %v1797_v16  ;;  %v1764_v25 = vpack.c.bf16 %v236_v24, %v235_v23  ;;  %v1767_v30 = vpack.c.bf16 %v314_v28, %v313_v27  ;;  %v391_v32 = vld [vmem:[#allocation2 + $0x40] sm:$0xff]  ;;  %v392_v33 = vld [vmem:[#allocation2 + $0x48] sm:$0xff]  ;;  %v469_v37 = vld [vmem:[#allocation2 + $0x50] sm:$0xff] }
  0x2b   :  { %1760 = vmatprep.subr.bf16.mxu0 %v1947_v2  ;;  %1799 = vmatprep.subr.bf16.mxu1 %v1947_v2  ;;  %v1770_v35 = vpack.c.bf16 %v392_v33, %v391_v32  ;;  %v470_v38 = vld [vmem:[#allocation2 + $0x58] sm:$0xff]  ;;  %v547_v42 = vld [vmem:[#allocation2 + $0x60] sm:$0xff]  ;;  %v548_v43 = vld [vmem:[#allocation2 + $0x68] sm:$0xff] }
  0x2c   :  { %1885 = vset.pattern.permute.xlu0 %v1950_v8  ;;  %1887 = vset.pattern.permute.xlu1 %v1951_v9  ;;  %v1773_v40 = vpack.c.bf16 %v470_v38, %v469_v37  ;;  %v1776_v45 = vpack.c.bf16 %v548_v43, %v547_v42  ;;  %v625_v47 = vld [vmem:[#allocation2 + $0x70] sm:$0xff]  ;;  %v626_v48 = vld [vmem:[#allocation2 + $0x78] sm:$0xff]  ;;  %v703_v52 = vld [vmem:[#allocation2 + $0x80] sm:$0xff] }
  0x2d   :  { %53 = vperm.xlu0 %1885, %v46_v3   ;;  %61 = vperm.xlu1 %1887, %v46_v3   ;;  %v1779_v50 = vpack.c.bf16 %v626_v48, %v625_v47  ;;  %v704_v53 = vld [vmem:[#allocation2 + $0x88] sm:$0xff]  ;;  %v786_v57 = vld [vmem:[#allocation4 + $0x20] sm:$0xff]  ;;  %v787_v58 = vld [vmem:[#allocation4 + $0x28] sm:$0xff] }
  0x2e   :  { %v1782_v55 = vpack.c.bf16 %v704_v53, %v703_v52  ;;  %v1785_v60 = vpack.c.bf16 %v787_v58, %v786_v57  ;;  %v941_v61 = vld [vmem:[#allocation4 + $0x50] sm:$0xff]  ;;  %v942_v62 = vld [vmem:[#allocation4 + $0x58] sm:$0xff]  ;;  %v1019_v4 = vld [vmem:[#allocation4 + $0x60] sm:$0xff] }
  0x2f   :  { %v788_v63 = vld [vmem:[#allocation4 + $0x30] sm:$0xff]  ;;  %v1800_v0 = vpack.c.bf16 %v942_v62, %v941_v61  ;;  %v789_v1 = vld [vmem:[#allocation4 + $0x38] sm:$0xff]  ;;  %v1020_v5 = vld [vmem:[#allocation4 + $0x68] sm:$0xff] }
  0x30   :  { %v780_v6 = vld [vmem:[#allocation4] sm:$0xff]  ;;  %v781_v8 = vld [vmem:[#allocation4 + $0x8] sm:$0xff]  ;;  %v1021_v14 = vld [vmem:[#allocation4 + $0x70] sm:$0xff] }
  0x31   :  { %1888 = vset.pattern.permute.xlu1 %v1952_v10  ;;  %1889 = vset.pattern.permute.xlu0 %v1953_v11  ;;  %v1022_v17 = vld [vmem:[#allocation4 + $0x78] sm:$0xff]  ;;  %v782_v18 = vld [vmem:[#allocation4 + $0x10] sm:$0xff]  ;;  %v1099_v23 = vld [vmem:[#allocation4 + $0x80] sm:$0xff] }
  0x32   :  { %65 = vperm.xlu1 %1888, %v46_v3   ;;  %69 = vperm.xlu0 %1889, %v46_v3   ;;  %v1102_v27 = vld [vmem:[#allocation4 + $0x98] sm:$0xff]  ;;  %v1181_v33 = vld [vmem:[#allocation4 + $0xb0] sm:$0xff]  ;;  %v1259_v37 = vld [vmem:[#allocation4 + $0xc0] sm:$0xff] }
  0x33   :  { %1801 = vmatpush3.bf16.msra.mxu1 %v1800_v0  ;;  %v1260_v38 = vld [vmem:[#allocation4 + $0xc8] sm:$0xff]  ;;  %v1262_v42 = vld [vmem:[#allocation4 + $0xd8] sm:$0xff]  ;;  %v1341_v48 = vld [vmem:[#allocation4 + $0xf0] sm:$0xff] }
  0x34   :  { %1802 = vmatprep.subr.bf16.mxu1 %v1947_v2  ;;  %v1419_v52 = vld [vmem:[#allocation4 + $0x100] sm:$0xff]  ;;  %v1420_v53 = vld [vmem:[#allocation4 + $0x108] sm:$0xff]  ;;  %v1422_v57 = vld [vmem:[#allocation4 + $0x118] sm:$0xff] }
  0x36   :  { %1890 = vset.pattern.permute.xlu1 %v1954_v12  ;;  %1892 = vset.pattern.permute.xlu0 %v1955_v13  ;;  %v1803_v12 = vpack.c.bf16 %v1020_v5, %v1019_v4 }
  0x37   :  { %73 = vperm.xlu1 %1890, %v46_v3  }
  0x3b   :  { %1891 = vset.pattern.permute.xlu1 %v1955_v13  ;;  %v1791_v13 = vpack.c.bf16 %v781_v8, %v780_v6 }
  0x3c   :  { %77 = vperm.xlu1 %1891, %v46_v3   ;;  %v1788_v3 = vpack.c.bf16 %v789_v1, %v788_v63 }
  0xa7   :  { %v2021_v20 = vpop.permute.xlu0 %49  ;;  %v2039_v31 = vpop.permute.xlu1 %57 }
  0xa8   :  { %v82_v22 = vmul.f32 %v2021_v20, %v2019_v19  ;;  %v311_v34 = vmul.f32 %v2039_v31, %v2019_v19 }
  0xaa   :  { %1600 = vmatmul.mubr.msk.f32.vlgmr.msra.gmra.mrb[0].mxu0 %vm86_vm1, %v82_v22 }
  0xab   :  { %1762 = vmatpush3.bf16.msra.mxu0 %v1761_v21  ;;  %1606 = vmatprep.mubr.msk.f32.mxu0 %vm1948_vm0, %v1949_v7  ;;  %v1806_v21 = vpack.c.bf16 %v1022_v17, %v1021_v14 }
  0xac   :  { %1763 = vmatprep.subr.bf16.mxu0 %v1947_v2  ;;  %v2031_v26 = vpop.permute.xlu0 %53  ;;  %v2047_v36 = vpop.permute.xlu1 %61 }
  0xad   :  { %v233_v29 = vmul.f32 %v2031_v26, %v2019_v19  ;;  %v389_v39 = vmul.f32 %v2047_v36, %v2019_v19 }
  0xb1   :  { %v2055_v41 = vpop.permute.xlu1 %65  ;;  %v2063_v46 = vpop.permute.xlu0 %69 }
  0xb2   :  { %1607 = vmatmul.mubr.msk.f32.vlgmr.msra.gmra.mrb[0].mxu0 %vm86_vm1, %v2019_v19  ;;  %v467_v44 = vmul.f32 %v2055_v41, %v2019_v19  ;;  %v545_v49 = vmul.f32 %v2063_v46, %v2019_v19 }
  0xb3   :  { %1765 = vmatpush3.bf16.msra.mxu0 %v1764_v25  ;;  %1613 = vmatprep.mubr.msk.f32.mxu0 %vm1948_vm0, %v1949_v7 }
  0xb4   :  { %1766 = vmatprep.subr.bf16.mxu0 %v1947_v2 }
  0xb6   :  { %v2071_v51 = vpop.permute.xlu1 %73 }
  0xb7   :  { %v623_v54 = vmul.f32 %v2071_v51, %v2019_v19 }
  0xba   :  { %1614 = vmatmul.mubr.msk.f32.vlgmr.msra.gmra.mrb[0].mxu0 %vm86_vm1, %v233_v29  ;;  %v1179_v29 = vld [vmem:[#allocation4 + $0xa0] sm:$0xff] }
  0xbb   :  { %1768 = vmatpush3.bf16.msra.mxu0 %v1767_v30  ;;  %1620 = vmatprep.mubr.msk.f32.mxu0 %vm1948_vm0, %v1949_v7  ;;  %v2079_v56 = vpop.permute.xlu1 %77  ;;  %v1180_v30 = vld [vmem:[#allocation4 + $0xa8] sm:$0xff] }
  0xbc   :  { %1769 = vmatprep.subr.bf16.mxu0 %v1947_v2  ;;  %v701_v59 = vmul.f32 %v2079_v56, %v2019_v19  ;;  %v783_v19 = vld [vmem:[#allocation4 + $0x18] sm:$0xff]  ;;  %v1815_v32 = vpack.c.bf16 %v1180_v30, %v1179_v29 }
  0xbd   :  { %v1794_v22 = vpack.c.bf16 %v783_v19, %v782_v18 }
  0xc2   :  { %1621 = vmatmul.mubr.msk.f32.vlgmr.msra.gmra.mrb[0].mxu0 %vm86_vm1, %v311_v34  ;;  %v1182_v34 = vld [vmem:[#allocation4 + $0xb8] sm:$0xff] }
  0xc3   :  { %1771 = vmatpush3.bf16.msra.mxu0 %v1770_v35  ;;  %1627 = vmatprep.mubr.msk.f32.mxu0 %vm1948_vm0, %v1949_v7  ;;  %v1818_v35 = vpack.c.bf16 %v1182_v34, %v1181_v33 }
  0xc4   :  { %1772 = vmatprep.subr.bf16.mxu0 %v1947_v2 }
  0xca   :  { %1628 = vmatmul.mubr.msk.f32.vlgmr.msra.gmra.mrb[0].mxu0 %vm86_vm1, %v389_v39  ;;  %v1821_v39 = vpack.c.bf16 %v1260_v38, %v1259_v37 }
  0xcb   :  { %1774 = vmatpush3.bf16.msra.mxu0 %v1773_v40  ;;  %1634 = vmatprep.mubr.msk.f32.mxu0 %vm1948_vm0, %v1949_v7  ;;  %v1261_v40 = vld [vmem:[#allocation4 + $0xd0] sm:$0xff] }
  0xcc   :  { %1775 = vmatprep.subr.bf16.mxu0 %v1947_v2  ;;  %v1824_v43 = vpack.c.bf16 %v1262_v42, %v1261_v40 }
  0xd2   :  { %1635 = vmatmul.mubr.msk.f32.vlgmr.msra.gmra.mrb[0].mxu0 %vm86_vm1, %v467_v44  ;;  %v1339_v44 = vld [vmem:[#allocation4 + $0xe0] sm:$0xff] }
  0xd3   :  { %1777 = vmatpush3.bf16.msra.mxu0 %v1776_v45  ;;  %1641 = vmatprep.mubr.msk.f32.mxu0 %vm1948_vm0, %v1949_v7  ;;  %v1340_v45 = vld [vmem:[#allocation4 + $0xe8] sm:$0xff] }
  0xd4   :  { %1778 = vmatprep.subr.bf16.mxu0 %v1947_v2  ;;  %v1827_v47 = vpack.c.bf16 %v1340_v45, %v1339_v44 }
  0xda   :  { %1642 = vmatmul.mubr.msk.f32.vlgmr.msra.gmra.mrb[0].mxu0 %vm86_vm1, %v545_v49  ;;  %v1342_v49 = vld [vmem:[#allocation4 + $0xf8] sm:$0xff] }
  0xdb   :  { %1780 = vmatpush3.bf16.msra.mxu0 %v1779_v50  ;;  %1648 = vmatprep.mubr.msk.f32.mxu0 %vm1948_vm0, %v1949_v7  ;;  %v1830_v50 = vpack.c.bf16 %v1342_v49, %v1341_v48 }
  0xdc   :  { %1781 = vmatprep.subr.bf16.mxu0 %v1947_v2 }
  0xe2   :  { %1649 = vmatmul.mubr.msk.f32.vlgmr.msra.gmra.mrb[0].mxu0 %vm86_vm1, %v623_v54  ;;  %v1833_v54 = vpack.c.bf16 %v1420_v53, %v1419_v52 }
  0xe3   :  { %1783 = vmatpush3.bf16.msra.mxu0 %v1782_v55  ;;  %1655 = vmatprep.mubr.msk.f32.mxu0 %vm1948_vm0, %v1949_v7  ;;  %v1421_v55 = vld [vmem:[#allocation4 + $0x110] sm:$0xff] }
  0xe4   :  { %1784 = vmatprep.subr.bf16.mxu0 %v1947_v2  ;;  %v1836_v58 = vpack.c.bf16 %v1422_v57, %v1421_v55 }
  0xea   :  { %1656 = vmatmul.mubr.msk.f32.vlgmr.msra.gmra.mrb[0].mxu0 %vm86_vm1, %v701_v59 }
  0xeb   :  { %1786 = vmatpush3.bf16.msra.mxu0 %v1785_v60  ;;  %1666 = vmatprep.mubr.msk.f32.mxu0 %vm1948_vm0, %v1949_v7 }
  0xec   :  { %1787 = vmatprep.subr.bf16.mxu0 %v1947_v2 }
  0xef   :  { %1789 = vmatpush3.bf16.msra.mxu0 %v1788_v3 }
  0xf0   :  { %1790 = vmatprep.subr.bf16.mxu0 %v1947_v2 }
 0x1bd   :  { %v774_v9 = vpop.f32.mrb[0].mxu0 }
 0x1be   :  { %v2092_v10 = vmax.f32 %v774_v9, 0.0  ;;  %v1657_v11 = vpop.f32.mrb[1].mxu0 }
 0x1c0   :  { %v784_v15 = vmul.f32 %v2092_v10, %v2021_v20  ;;  %v937_v16 = vmul.f32 %v2092_v10, %v2031_v26  ;;  %v1100_v20 = vld [vmem:[#allocation4 + $0x88] sm:$0xff]  ;;  %v1017_v25 = vmul.f32 %v2092_v10, %v2039_v31  ;;  %v1101_v26 = vld [vmem:[#allocation4 + $0x90] sm:$0xff]  ;;  %v1097_v31 = vmul.f32 %v2092_v10, %v2047_v36 }
 0x1c1   :  { %v1809_v24 = vpack.c.bf16 %v1100_v20, %v1099_v23  ;;  %v1812_v28 = vpack.c.bf16 %v1102_v27, %v1101_v26  ;;  %v1177_v36 = vmul.f32 %v2092_v10, %v2055_v41  ;;  %v1257_v41 = vmul.f32 %v2092_v10, %v2063_v46 }
 0x1c2   :  { %1667 = vmatmul.mubr.msk.f32.vlgmr.msra.gmra.mrb[2].mxu0 %vm790_vm2, %v784_v15  ;;  %1689 = vmatmul.mubr.msk.f32.vlgmr.msra.gmra.mrb[0].mxu1 %vm790_vm2, %v937_v16  ;;  %v1337_v46 = vmul.f32 %v2092_v10, %v2071_v51  ;;  %v1417_v59 = vmul.f32 %v2092_v10, %v2079_v56 }
 0x1c3   :  { %1804 = vmatpush3.bf16.msra.mxu1 %v1803_v12  ;;  %1792 = vmatpush3.bf16.msra.mxu0 %v1791_v13 }
 0x1c4   :  { %1805 = vmatprep.subr.bf16.mxu1 %v1947_v2  ;;  %1793 = vmatprep.subr.bf16.mxu0 %v1947_v2 }
 0x1c5   :  { %1677 = vmatprep.mubr.msk.f32.mxu0 %vm1948_vm0, %v1949_v7  ;;  %1699 = vmatprep.mubr.msk.f32.mxu1 %vm1948_vm0, %v1949_v7 }
 0x1c7   :  { %1807 = vmatpush3.bf16.msra.mxu1 %v1806_v21  ;;  %1795 = vmatpush3.bf16.msra.mxu0 %v1794_v22 }
 0x1c8   :  { %1808 = vmatprep.subr.bf16.mxu1 %v1947_v2 }
 0x1ca   :  { %1678 = vmatmul.mubr.msk.f32.vlgmr.msra.gmra.mrb[2].mxu0 %vm790_vm2, %v2092_v10  ;;  %1700 = vmatmul.mubr.msk.f32.vlgmr.msra.gmra.mrb[0].mxu1 %vm790_vm2, %v1017_v25 }
 0x1cb   :  { %1810 = vmatpush3.bf16.msra.mxu1 %v1809_v24  ;;  %1710 = vmatprep.mubr.msk.f32.mxu1 %vm1948_vm0, %v1949_v7 }
 0x1cc   :  { %1811 = vmatprep.subr.bf16.mxu1 %v1947_v2 }
 0x1cf   :  { %1813 = vmatpush3.bf16.msra.mxu1 %v1812_v28 }
 0x1d0   :  { %1814 = vmatprep.subr.bf16.mxu1 %v1947_v2 }
 0x1d2   :  { %1711 = vmatmul.mubr.msk.f32.vlgmr.msra.gmra.mrb[0].mxu1 %vm790_vm2, %v1097_v31 }
 0x1d3   :  { %1816 = vmatpush3.bf16.msra.mxu1 %v1815_v32  ;;  %1721 = vmatprep.mubr.msk.f32.mxu1 %vm1948_vm0, %v1949_v7 }
 0x1d4   :  { %1817 = vmatprep.subr.bf16.mxu1 %v1947_v2 }
 0x1d7   :  { %1819 = vmatpush3.bf16.msra.mxu1 %v1818_v35 }
 0x1d8   :  { %1820 = vmatprep.subr.bf16.mxu1 %v1947_v2 }
 0x1da   :  { %1722 = vmatmul.mubr.msk.f32.vlgmr.msra.gmra.mrb[0].mxu1 %vm790_vm2, %v1177_v36 }
 0x1db   :  { %1822 = vmatpush3.bf16.msra.mxu1 %v1821_v39  ;;  %1732 = vmatprep.mubr.msk.f32.mxu1 %vm1948_vm0, %v1949_v7 }
 0x1dc   :  { %1823 = vmatprep.subr.bf16.mxu1 %v1947_v2 }
 0x1df   :  { %1825 = vmatpush3.bf16.msra.mxu1 %v1824_v43 }
 0x1e0   :  { %1826 = vmatprep.subr.bf16.mxu1 %v1947_v2 }
 0x1e2   :  { %1733 = vmatmul.mubr.msk.f32.vlgmr.msra.gmra.mrb[0].mxu1 %vm790_vm2, %v1257_v41 }
 0x1e3   :  { %1828 = vmatpush3.bf16.msra.mxu1 %v1827_v47  ;;  %1743 = vmatprep.mubr.msk.f32.mxu1 %vm1948_vm0, %v1949_v7 }
 0x1e4   :  { %1829 = vmatprep.subr.bf16.mxu1 %v1947_v2 }
 0x1e7   :  { %1831 = vmatpush3.bf16.msra.mxu1 %v1830_v50 }
 0x1e8   :  { %1832 = vmatprep.subr.bf16.mxu1 %v1947_v2 }
 0x1ea   :  { %1744 = vmatmul.mubr.msk.f32.vlgmr.msra.gmra.mrb[0].mxu1 %vm790_vm2, %v1337_v46 }
 0x1eb   :  { %1834 = vmatpush3.bf16.msra.mxu1 %v1833_v54  ;;  %1754 = vmatprep.mubr.msk.f32.mxu1 %vm1948_vm0, %v1949_v7 }
 0x1ec   :  { %1835 = vmatprep.subr.bf16.mxu1 %v1947_v2 }
 0x1ef   :  { %1837 = vmatpush3.bf16.msra.mxu1 %v1836_v58 }
 0x1f2   :  { %1755 = vmatmul.mubr.msk.f32.vlgmr.msra.gmra.mrb[0].mxu1 %vm790_vm2, %v1417_v59 }
 0x29d   :  { %v933_v60 = vpop.f32.mrb[2].mxu0 }
 0x29e   :  { %v1679_v61 = vpop.f32.mrb[3].mxu0 }
 0x2c5   :  { %v1492_v51 = vpop.f32.mrb[0].mxu1 }
 0x2c6   :  { %v1838_v62 = vadd.f32 %v1492_v51, %v933_v60  ;;  %v1756_v63 = vpop.f32.mrb[1].mxu1 }
 0x2c8   :  { %v1497_v0 = vmax.f32 %v1838_v62, 0.0 }
 0x2ca   :  { %1498 = vst [vmem:[%s2153_s4] sm:$0xff] %v1497_v0 }
 0x2cb   :  { %1503 = vsyncpa [#allocation3], 1 }
 0x2cc   :  { %1504 = vsyncpa [#allocation5], 1 }

// kernel: _dendro_forward.1
= control target key start
LH: loop header
LB: loop body
LE: loop exit
PB: predicated region body
PF: predicated region fallthrough
CT: control target
= control target key end

     0   :  { %9 = vsyncpa [#allocation3], 0  ;;  %s2149_s0 = inlined_call_operand.vmem [shape: f32[8,16], index: 0, kind: input, shape index: {}]   ;;  %s2150_s1 = inlined_call_operand.vmem [shape: f32[8,8], index: 1, kind: input, shape index: {}]   ;;  %s2151_s2 = inlined_call_operand.hbm [shape: f32[9,16,128], index: 2, kind: input, shape index: {}]   ;;  %s2152_s3 = inlined_call_operand.hbm [shape: f32[9,32,128], index: 3, kind: input, shape index: {}]   ;;  %s2153_s4 = inlined_call_operand.vmem [shape: f32[8,128], index: 4, kind: output, shape index: {}]  }
   0x1   :  { %10 = vsyncpa [#allocation5], 0  ;;  %s1941_s15 = smov [#allocation2]   ;;  %s1893_s19 = scalar_lea.hbm %s2151_s2, 2304 }
   0x2   :  { %s20_s16 = sshll.u32 %s1941_s15, 4  ;;  %p1894_p0 = scmp.ne.s32.totalorder %s2151_s2, %s1893_s19  ;;  %s21_s16 = int_to_ptr.vmem [resolvable:$true] %s20_s16 }
   0x3   :  { %p1897_p1 = scmp.lt.u32.totalorder %s1893_s19, %s2151_s2 }
   0x5   :  { %p1899_p2 = pnand %p1897_p1, %p1894_p0 }
   0x7   :  { %1902 = shalt.err (!%p1899_p2)
}
   0x8   :  { %s1903_s24 = scalar_lea.vmem %s21_s16, 2304  ;;  %p1908_p4 = scmp.lt.s32.totalorder %s21_s16, %s21_s16 }
   0x9   :  { %p1904_p3 = scmp.ne.s32.totalorder %s21_s16, %s1903_s24  ;;  %p1909_p5 = scmp.lt.s32.totalorder %s1903_s24, %s1903_s24 }
   0xb   :  { %p1910_p6 = por %p1909_p5, %p1908_p4 }
   0xd   :  { %p1911_p7 = pnand %p1910_p6, %p1904_p3 }
   0xf   :  { %1914 = shalt.err (!%p1911_p7)
}
  0x10   :  { %s1942_s25 = smov 128   ;;  %s1943_s26 = smov 8  }
  0x11   :  { %26 = dma.hbm_to_vmem [thread:$0]  %s2151_s2, 2304, %s21_s16, [#allocation3], %s1942_s25, %s1942_s25, %s1943_s26  }
  0x12   :  { %s1944_s29 = smov [#allocation4]   ;;  %s1915_s7 = scalar_lea.hbm %s2152_s3, 4608 }
  0x13   :  { %s32_s30 = sshll.u32 %s1944_s29, 4  ;;  %p1916_p8 = scmp.ne.s32.totalorder %s2152_s3, %s1915_s7  ;;  %s33_s30 = int_to_ptr.vmem [resolvable:$true] %s32_s30 }
  0x14   :  { %p1919_p9 = scmp.lt.u32.totalorder %s1915_s7, %s2152_s3 }
  0x16   :  { %p1921_p10 = pnand %p1919_p9, %p1916_p8 }
  0x18   :  { %1924 = shalt.err (!%p1921_p10)
}
  0x19   :  { %s1925_s12 = scalar_lea.vmem %s33_s30, 4608  ;;  %p1930_p12 = scmp.lt.s32.totalorder %s33_s30, %s33_s30 }
  0x1a   :  { %p1926_p11 = scmp.ne.s32.totalorder %s33_s30, %s1925_s12  ;;  %p1931_p13 = scmp.lt.s32.totalorder %s1925_s12, %s1925_s12 }
  0x1c   :  { %p1932_p0 = por %p1931_p13, %p1930_p12 }
  0x1e   :  { %p1933_p1 = pnand %p1932_p0, %p1926_p11 }
  0x20   :  { %1936 = shalt.err (!%p1933_p1)
}
  0x21   :  { %38 = dma.hbm_to_vmem [thread:$0]  %s2152_s3, 4608, %s33_s30, [#allocation5], %s1942_s25, %s1942_s25, %s1943_s26  }
  0x22   :  { %1937 = dma.done.wait [#allocation3], 2304  }
  0x23   :  { %1938 = vsyncadd [#allocation3], 4294964992 }
  0x24   :  { %1939 = dma.done.wait [#allocation5], 4608  }
  0x25   :  { %1940 = vsyncadd [#allocation5], 4294962688  ;;  %v1945_v0 = vmov 0   ;;  %v1946_v1 = vmov 2   ;;  %v1947_v2 = vmov 0.0|0.0   ;;  %v46_v3 = vld [vmem:[%s2150_s1] sm:$0xff] }
  0x26   :  { %1884 = vset.pattern.permute.xlu0 %v1945_v0  ;;  %1886 = vset.pattern.permute.xlu1 %v1946_v1  ;;  %v84_v4 = vld [vmem:[#allocation2 + $0x10] sm:$0xff]  ;;  %v85_v5 = vld [vmem:[#allocation2 + $0x18] sm:$0xff]  ;;  %vm1948_vm0 = vmmov 0   ;;  %v1949_v7 = vmov 0.0   ;;  %v1950_v8 = vmov 1   ;;  %v1951_v9 = vmov 3  }
  0x27   :  { %1757 = vmatprep.subr.bf16.mxu0 %v1947_v2  ;;  %1796 = vmatprep.subr.bf16.mxu1 %v1947_v2  ;;  %v1758_v6 = vpack.c.bf16 %v85_v5, %v84_v4  ;;  %v1952_v10 = vmov 4   ;;  %v1953_v11 = vmov 5   ;;  %v1954_v12 = vmov 6   ;;  %v939_v14 = vld [vmem:[#allocation4 + $0x40] sm:$0xff]  ;;  %v940_v15 = vld [vmem:[#allocation4 + $0x48] sm:$0xff]  ;;  %v80_v17 = vld [vmem:[#allocation2] sm:$0xff] }
  0x28   :  { %49 = vperm.xlu0 %1884, %v46_v3   ;;  %57 = vperm.xlu1 %1886, %v46_v3   ;;  %v1955_v13 = vmov 7   ;;  %v1797_v16 = vpack.c.bf16 %v940_v15, %v939_v14  ;;  %v81_v18 = vld [vmem:[#allocation2 + $0x8] sm:$0xff]  ;;  %v2019_v19 = vld [vmem:[%s2149_s0] sm:$0xff]  ;;  %vm86_vm1 = vcmask 130048   ;;  %v313_v27 = vld [vmem:[#allocation2 + $0x30] sm:$0xff]  ;;  %vm790_vm2 = vcmask 261120  }
  0x29   :  { %1599 = vmatprep.mubr.msk.f32.mxu0 %vm1948_vm0, %v1949_v7  ;;  %1688 = vmatprep.mubr.msk.f32.mxu1 %vm1948_vm0, %v1949_v7  ;;  %v1761_v21 = vpack.c.bf16 %v81_v18, %v80_v17  ;;  %v235_v23 = vld [vmem:[#allocation2 + $0x20] sm:$0xff]  ;;  %v236_v24 = vld [vmem:[#allocation2 + $0x28] sm:$0xff]  ;;  %v314_v28 = vld [vmem:[#allocation2 + $0x38] sm:$0xff] }
  0x2a   :  { %1759 = vmatpush3.bf16.msra.mxu0 %v1758_v6  ;;  %1798 = vmatpush3.bf16.msra.mxu1 %v1797_v16  ;;  %v1764_v25 = vpack.c.bf16 %v236_v24, %v235_v23  ;;  %v1767_v30 = vpack.c.bf16 %v314_v28, %v313_v27  ;;  %v391_v32 = vld [vmem:[#allocation2 + $0x40] sm:$0xff]  ;;  %v392_v33 = vld [vmem:[#allocation2 + $0x48] sm:$0xff]  ;;  %v469_v37 = vld [vmem:[#allocation2 + $0x50] sm:$0xff] }
  0x2b   :  { %1760 = vmatprep.subr.bf16.mxu0 %v1947_v2  ;;  %1799 = vmatprep.subr.bf16.mxu1 %v1947_v2  ;;  %v1770_v35 = vpack.c.bf16 %v392_v33, %v391_v32  ;;  %v470_v38 = vld [vmem:[#allocation2 + $0x58] sm:$0xff]  ;;  %v547_v42 = vld [vmem:[#allocation2 + $0x60] sm:$0xff]  ;;  %v548_v43 = vld [vmem:[#allocation2 + $0x68] sm:$0xff] }
  0x2c   :  { %1885 = vset.pattern.permute.xlu0 %v1950_v8  ;;  %1887 = vset.pattern.permute.xlu1 %v1951_v9  ;;  %v1773_v40 = vpack.c.bf16 %v470_v38, %v469_v37  ;;  %v1776_v45 = vpack.c.bf16 %v548_v43, %v547_v42  ;;  %v625_v47 = vld [vmem:[#allocation2 + $0x70] sm:$0xff]  ;;  %v626_v48 = vld [vmem:[#allocation2 + $0x78] sm:$0xff]  ;;  %v703_v52 = vld [vmem:[#allocation2 + $0x80] sm:$0xff] }
  0x2d   :  { %53 = vperm.xlu0 %1885, %v46_v3   ;;  %61 = vperm.xlu1 %1887, %v46_v3   ;;  %v1779_v50 = vpack.c.bf16 %v626_v48, %v625_v47  ;;  %v704_v53 = vld [vmem:[#allocation2 + $0x88] sm:$0xff]  ;;  %v786_v57 = vld [vmem:[#allocation4 + $0x20] sm:$0xff]  ;;  %v787_v58 = vld [vmem:[#allocation4 + $0x28] sm:$0xff] }
  0x2e   :  { %v1782_v55 = vpack.c.bf16 %v704_v53, %v703_v52  ;;  %v1785_v60 = vpack.c.bf16 %v787_v58, %v786_v57  ;;  %v941_v61 = vld [vmem:[#allocation4 + $0x50] sm:$0xff]  ;;  %v942_v62 = vld [vmem:[#allocation4 + $0x58] sm:$0xff]  ;;  %v1019_v4 = vld [vmem:[#allocation4 + $0x60] sm:$0xff] }
  0x2f   :  { %v788_v63 = vld [vmem:[#allocation4 + $0x30] sm:$0xff]  ;;  %v1800_v0 = vpack.c.bf16 %v942_v62, %v941_v61  ;;  %v789_v1 = vld [vmem:[#allocation4 + $0x38] sm:$0xff]  ;;  %v1020_v5 = vld [vmem:[#allocation4 + $0x68] sm:$0xff] }
  0x30   :  { %v780_v6 = vld [vmem:[#allocation4] sm:$0xff]  ;;  %v781_v8 = vld [vmem:[#allocation4 + $0x8] sm:$0xff]  ;;  %v1021_v14 = vld [vmem:[#allocation4 + $0x70] sm:$0xff] }
  0x31   :  { %1888 = vset.pattern.permute.xlu1 %v1952_v10  ;;  %1889 = vset.pattern.permute.xlu0 %v1953_v11  ;;  %v1022_v17 = vld [vmem:[#allocation4 + $0x78] sm:$0xff]  ;;  %v782_v18 = vld [vmem:[#allocation4 + $0x10] sm:$0xff]  ;;  %v1099_v23 = vld [vmem:[#allocation4 + $0x80] sm:$0xff] }
  0x32   :  { %65 = vperm.xlu1 %1888, %v46_v3   ;;  %69 = vperm.xlu0 %1889, %v46_v3   ;;  %v1102_v27 = vld [vmem:[#allocation4 + $0x98] sm:$0xff]  ;;  %v1181_v33 = vld [vmem:[#allocation4 + $0xb0] sm:$0xff]  ;;  %v1259_v37 = vld [vmem:[#allocation4 + $0xc0] sm:$0xff] }
  0x33   :  { %1801 = vmatpush3.bf16.msra.mxu1 %v1800_v0  ;;  %v1260_v38 = vld [vmem:[#allocation4 + $0xc8] sm:$0xff]  ;;  %v1262_v42 = vld [vmem:[#allocation4 + $0xd8] sm:$0xff]  ;;  %v1341_v48 = vld [vmem:[#allocation4 + $0xf0] sm:$0xff] }
  0x34   :  { %1802 = vmatprep.subr.bf16.mxu1 %v1947_v2  ;;  %v1419_v52 = vld [vmem:[#allocation4 + $0x100] sm:$0xff]  ;;  %v1420_v53 = vld [vmem:[#allocation4 + $0x108] sm:$0xff]  ;;  %v1422_v57 = vld [vmem:[#allocation4 + $0x118] sm:$0xff] }
  0x36   :  { %1890 = vset.pattern.permute.xlu1 %v1954_v12  ;;  %1892 = vset.pattern.permute.xlu0 %v1955_v13  ;;  %v1803_v12 = vpack.c.bf16 %v1020_v5, %v1019_v4 }
  0x37   :  { %73 = vperm.xlu1 %1890, %v46_v3  }
  0x3b   :  { %1891 = vset.pattern.permute.xlu1 %v1955_v13  ;;  %v1791_v13 = vpack.c.bf16 %v781_v8, %v780_v6 }
  0x3c   :  { %77 = vperm.xlu1 %1891, %v46_v3   ;;  %v1788_v3 = vpack.c.bf16 %v789_v1, %v788_v63 }
  0xa7   :  { %v2021_v20 = vpop.permute.xlu0 %49  ;;  %v2039_v31 = vpop.permute.xlu1 %57 }
  0xa8   :  { %v82_v22 = vmul.f32 %v2021_v20, %v2019_v19  ;;  %v311_v34 = vmul.f32 %v2039_v31, %v2019_v19 }
  0xaa   :  { %1600 = vmatmul.mubr.msk.f32.vlgmr.msra.gmra.mrb[0].mxu0 %vm86_vm1, %v82_v22 }
  0xab   :  { %1762 = vmatpush3.bf16.msra.mxu0 %v1761_v21  ;;  %1606 = vmatprep.mubr.msk.f32.mxu0 %vm1948_vm0, %v1949_v7  ;;  %v1806_v21 = vpack.c.bf16 %v1022_v17, %v1021_v14 }
  0xac   :  { %1763 = vmatprep.subr.bf16.mxu0 %v1947_v2  ;;  %v2031_v26 = vpop.permute.xlu0 %53  ;;  %v2047_v36 = vpop.permute.xlu1 %61 }
  0xad   :  { %v233_v29 = vmul.f32 %v2031_v26, %v2019_v19  ;;  %v389_v39 = vmul.f32 %v2047_v36, %v2019_v19 }
  0xb1   :  { %v2055_v41 = vpop.permute.xlu1 %65  ;;  %v2063_v46 = vpop.permute.xlu0 %69 }
  0xb2   :  { %1607 = vmatmul.mubr.msk.f32.vlgmr.msra.gmra.mrb[0].mxu0 %vm86_vm1, %v2019_v19  ;;  %v467_v44 = vmul.f32 %v2055_v41, %v2019_v19  ;;  %v545_v49 = vmul.f32 %v2063_v46, %v2019_v19 }
  0xb3   :  { %1765 = vmatpush3.bf16.msra.mxu0 %v1764_v25  ;;  %1613 = vmatprep.mubr.msk.f32.mxu0 %vm1948_vm0, %v1949_v7 }
  0xb4   :  { %1766 = vmatprep.subr.bf16.mxu0 %v1947_v2 }
  0xb6   :  { %v2071_v51 = vpop.permute.xlu1 %73 }
  0xb7   :  { %v623_v54 = vmul.f32 %v2071_v51, %v2019_v19 }
  0xba   :  { %1614 = vmatmul.mubr.msk.f32.vlgmr.msra.gmra.mrb[0].mxu0 %vm86_vm1, %v233_v29  ;;  %v1179_v29 = vld [vmem:[#allocation4 + $0xa0] sm:$0xff] }
  0xbb   :  { %1768 = vmatpush3.bf16.msra.mxu0 %v1767_v30  ;;  %1620 = vmatprep.mubr.msk.f32.mxu0 %vm1948_vm0, %v1949_v7  ;;  %v2079_v56 = vpop.permute.xlu1 %77  ;;  %v1180_v30 = vld [vmem:[#allocation4 + $0xa8] sm:$0xff] }
  0xbc   :  { %1769 = vmatprep.subr.bf16.mxu0 %v1947_v2  ;;  %v701_v59 = vmul.f32 %v2079_v56, %v2019_v19  ;;  %v783_v19 = vld [vmem:[#allocation4 + $0x18] sm:$0xff]  ;;  %v1815_v32 = vpack.c.bf16 %v1180_v30, %v1179_v29 }
  0xbd   :  { %v1794_v22 = vpack.c.bf16 %v783_v19, %v782_v18 }
  0xc2   :  { %1621 = vmatmul.mubr.msk.f32.vlgmr.msra.gmra.mrb[0].mxu0 %vm86_vm1, %v311_v34  ;;  %v1182_v34 = vld [vmem:[#allocation4 + $0xb8] sm:$0xff] }
  0xc3   :  { %1771 = vmatpush3.bf16.msra.mxu0 %v1770_v35  ;;  %1627 = vmatprep.mubr.msk.f32.mxu0 %vm1948_vm0, %v1949_v7  ;;  %v1818_v35 = vpack.c.bf16 %v1182_v34, %v1181_v33 }
  0xc4   :  { %1772 = vmatprep.subr.bf16.mxu0 %v1947_v2 }
  0xca   :  { %1628 = vmatmul.mubr.msk.f32.vlgmr.msra.gmra.mrb[0].mxu0 %vm86_vm1, %v389_v39  ;;  %v1821_v39 = vpack.c.bf16 %v1260_v38, %v1259_v37 }
  0xcb   :  { %1774 = vmatpush3.bf16.msra.mxu0 %v1773_v40  ;;  %1634 = vmatprep.mubr.msk.f32.mxu0 %vm1948_vm0, %v1949_v7  ;;  %v1261_v40 = vld [vmem:[#allocation4 + $0xd0] sm:$0xff] }
  0xcc   :  { %1775 = vmatprep.subr.bf16.mxu0 %v1947_v2  ;;  %v1824_v43 = vpack.c.bf16 %v1262_v42, %v1261_v40 }
  0xd2   :  { %1635 = vmatmul.mubr.msk.f32.vlgmr.msra.gmra.mrb[0].mxu0 %vm86_vm1, %v467_v44  ;;  %v1339_v44 = vld [vmem:[#allocation4 + $0xe0] sm:$0xff] }
  0xd3   :  { %1777 = vmatpush3.bf16.msra.mxu0 %v1776_v45  ;;  %1641 = vmatprep.mubr.msk.f32.mxu0 %vm1948_vm0, %v1949_v7  ;;  %v1340_v45 = vld [vmem:[#allocation4 + $0xe8] sm:$0xff] }
  0xd4   :  { %1778 = vmatprep.subr.bf16.mxu0 %v1947_v2  ;;  %v1827_v47 = vpack.c.bf16 %v1340_v45, %v1339_v44 }
  0xda   :  { %1642 = vmatmul.mubr.msk.f32.vlgmr.msra.gmra.mrb[0].mxu0 %vm86_vm1, %v545_v49  ;;  %v1342_v49 = vld [vmem:[#allocation4 + $0xf8] sm:$0xff] }
  0xdb   :  { %1780 = vmatpush3.bf16.msra.mxu0 %v1779_v50  ;;  %1648 = vmatprep.mubr.msk.f32.mxu0 %vm1948_vm0, %v1949_v7  ;;  %v1830_v50 = vpack.c.bf16 %v1342_v49, %v1341_v48 }
  0xdc   :  { %1781 = vmatprep.subr.bf16.mxu0 %v1947_v2 }
  0xe2   :  { %1649 = vmatmul.mubr.msk.f32.vlgmr.msra.gmra.mrb[0].mxu0 %vm86_vm1, %v623_v54  ;;  %v1833_v54 = vpack.c.bf16 %v1420_v53, %v1419_v52 }
  0xe3   :  { %1783 = vmatpush3.bf16.msra.mxu0 %v1782_v55  ;;  %1655 = vmatprep.mubr.msk.f32.mxu0 %vm1948_vm0, %v1949_v7  ;;  %v1421_v55 = vld [vmem:[#allocation4 + $0x110] sm:$0xff] }
  0xe4   :  { %1784 = vmatprep.subr.bf16.mxu0 %v1947_v2  ;;  %v1836_v58 = vpack.c.bf16 %v1422_v57, %v1421_v55 }
  0xea   :  { %1656 = vmatmul.mubr.msk.f32.vlgmr.msra.gmra.mrb[0].mxu0 %vm86_vm1, %v701_v59 }
  0xeb   :  { %1786 = vmatpush3.bf16.msra.mxu0 %v1785_v60  ;;  %1666 = vmatprep.mubr.msk.f32.mxu0 %vm1948_vm0, %v1949_v7 }
  0xec   :  { %1787 = vmatprep.subr.bf16.mxu0 %v1947_v2 }
  0xef   :  { %1789 = vmatpush3.bf16.msra.mxu0 %v1788_v3 }
  0xf0   :  { %1790 = vmatprep.subr.bf16.mxu0 %v1947_v2 }
 0x1bd   :  { %v774_v9 = vpop.f32.mrb[0].mxu0 }
 0x1be   :  { %v2092_v10 = vmax.f32 %v774_v9, 0.0  ;;  %v1657_v11 = vpop.f32.mrb[1].mxu0 }
 0x1c0   :  { %v784_v15 = vmul.f32 %v2092_v10, %v2021_v20  ;;  %v937_v16 = vmul.f32 %v2092_v10, %v2031_v26  ;;  %v1100_v20 = vld [vmem:[#allocation4 + $0x88] sm:$0xff]  ;;  %v1017_v25 = vmul.f32 %v2092_v10, %v2039_v31  ;;  %v1101_v26 = vld [vmem:[#allocation4 + $0x90] sm:$0xff]  ;;  %v1097_v31 = vmul.f32 %v2092_v10, %v2047_v36 }
 0x1c1   :  { %v1809_v24 = vpack.c.bf16 %v1100_v20, %v1099_v23  ;;  %v1812_v28 = vpack.c.bf16 %v1102_v27, %v1101_v26  ;;  %v1177_v36 = vmul.f32 %v2092_v10, %v2055_v41  ;;  %v1257_v41 = vmul.f32 %v2092_v10, %v2063_v46 }
 0x1c2   :  { %1667 = vmatmul.mubr.msk.f32.vlgmr.msra.gmra.mrb[2].mxu0 %vm790_vm2, %v784_v15  ;;  %1689 = vmatmul.mubr.msk.f32.vlgmr.msra.gmra.mrb[0].mxu1 %vm790_vm2, %v937_v16  ;;  %v1337_v46 = vmul.f32 %v2092_v10, %v2071_v51  ;;  %v1417_v59 = vmul.f32 %v2092_v10, %v2079_v56 }
 0x1c3   :  { %1804 = vmatpush3.bf16.msra.mxu1 %v1803_v12  ;;  %1792 = vmatpush3.bf16.msra.mxu0 %v1791_v13 }
 0x1c4   :  { %1805 = vmatprep.subr.bf16.mxu1 %v1947_v2  ;;  %1793 = vmatprep.subr.bf16.mxu0 %v1947_v2 }
 0x1c5   :  { %1677 = vmatprep.mubr.msk.f32.mxu0 %vm1948_vm0, %v1949_v7  ;;  %1699 = vmatprep.mubr.msk.f32.mxu1 %vm1948_vm0, %v1949_v7 }
 0x1c7   :  { %1807 = vmatpush3.bf16.msra.mxu1 %v1806_v21  ;;  %1795 = vmatpush3.bf16.msra.mxu0 %v1794_v22 }
 0x1c8   :  { %1808 = vmatprep.subr.bf16.mxu1 %v1947_v2 }
 0x1ca   :  { %1678 = vmatmul.mubr.msk.f32.vlgmr.msra.gmra.mrb[2].mxu0 %vm790_vm2, %v2092_v10  ;;  %1700 = vmatmul.mubr.msk.f32.vlgmr.msra.gmra.mrb[0].mxu1 %vm790_vm2, %v1017_v25 }
 0x1cb   :  { %1810 = vmatpush3.bf16.msra.mxu1 %v1809_v24  ;;  %1710 = vmatprep.mubr.msk.f32.mxu1 %vm1948_vm0, %v1949_v7 }
 0x1cc   :  { %1811 = vmatprep.subr.bf16.mxu1 %v1947_v2 }
 0x1cf   :  { %1813 = vmatpush3.bf16.msra.mxu1 %v1812_v28 }
 0x1d0   :  { %1814 = vmatprep.subr.bf16.mxu1 %v1947_v2 }
 0x1d2   :  { %1711 = vmatmul.mubr.msk.f32.vlgmr.msra.gmra.mrb[0].mxu1 %vm790_vm2, %v1097_v31 }
 0x1d3   :  { %1816 = vmatpush3.bf16.msra.mxu1 %v1815_v32  ;;  %1721 = vmatprep.mubr.msk.f32.mxu1 %vm1948_vm0, %v1949_v7 }
 0x1d4   :  { %1817 = vmatprep.subr.bf16.mxu1 %v1947_v2 }
 0x1d7   :  { %1819 = vmatpush3.bf16.msra.mxu1 %v1818_v35 }
 0x1d8   :  { %1820 = vmatprep.subr.bf16.mxu1 %v1947_v2 }
 0x1da   :  { %1722 = vmatmul.mubr.msk.f32.vlgmr.msra.gmra.mrb[0].mxu1 %vm790_vm2, %v1177_v36 }
 0x1db   :  { %1822 = vmatpush3.bf16.msra.mxu1 %v1821_v39  ;;  %1732 = vmatprep.mubr.msk.f32.mxu1 %vm1948_vm0, %v1949_v7 }
 0x1dc   :  { %1823 = vmatprep.subr.bf16.mxu1 %v1947_v2 }
 0x1df   :  { %1825 = vmatpush3.bf16.msra.mxu1 %v1824_v43 }
 0x1e0   :  { %1826 = vmatprep.subr.bf16.mxu1 %v1947_v2 }
 0x1e2   :  { %1733 = vmatmul.mubr.msk.f32.vlgmr.msra.gmra.mrb[0].mxu1 %vm790_vm2, %v1257_v41 }
 0x1e3   :  { %1828 = vmatpush3.bf16.msra.mxu1 %v1827_v47  ;;  %1743 = vmatprep.mubr.msk.f32.mxu1 %vm1948_vm0, %v1949_v7 }
 0x1e4   :  { %1829 = vmatprep.subr.bf16.mxu1 %v1947_v2 }
 0x1e7   :  { %1831 = vmatpush3.bf16.msra.mxu1 %v1830_v50 }
 0x1e8   :  { %1832 = vmatprep.subr.bf16.mxu1 %v1947_v2 }
 0x1ea   :  { %1744 = vmatmul.mubr.msk.f32.vlgmr.msra.gmra.mrb[0].mxu1 %vm790_vm2, %v1337_v46 }
 0x1eb   :  { %1834 = vmatpush3.bf16.msra.mxu1 %v1833_v54  ;;  %1754 = vmatprep.mubr.msk.f32.mxu1 %vm1948_vm0, %v1949_v7 }
 0x1ec   :  { %1835 = vmatprep.subr.bf16.mxu1 %v1947_v2 }
 0x1ef   :  { %1837 = vmatpush3.bf16.msra.mxu1 %v1836_v58 }
 0x1f2   :  { %1755 = vmatmul.mubr.msk.f32.vlgmr.msra.gmra.mrb[0].mxu1 %vm790_vm2, %v1417_v59 }
 0x29d   :  { %v933_v60 = vpop.f32.mrb[2].mxu0 }
 0x29e   :  { %v1679_v61 = vpop.f32.mrb[3].mxu0 }
 0x2c5   :  { %v1492_v51 = vpop.f32.mrb[0].mxu1 }
 0x2c6   :  { %v1838_v62 = vadd.f32 %v1492_v51, %v933_v60  ;;  %v1756_v63 = vpop.f32.mrb[1].mxu1 }
 0x2c8   :  { %v1497_v0 = vmax.f32 %v1838_v62, 0.0 }
 0x2ca   :  { %1498 = vst [vmem:[%s2153_s4] sm:$0xff] %v1497_v0 }
 0x2cb   :  { %1503 = vsyncpa [#allocation3], 1 }
 0x2cc   :  { %1504 = vsyncpa [#allocation5], 1 }

</bundles_post_ra>
